<compile_context>
chip_gen: v7x
topology: tpu7x:2x2x1
jax: 0.10.0
libtpu: 0.0.40
codegen_flags: <defaults>
</compile_context>

<pallas_src>
import functools

import jax
import jax.numpy as jnp
from jax.experimental import pallas as pl
from jax.experimental.pallas import tpu as pltpu


# ------------------------------ fused kernel --------------------------------

def _fd_block_kernel(xid_ref, xpo_ref,
                     wei_ref, bei_ref, wep_ref, bep_ref,          # extractors
                     w1i_ref, b1i_ref, w2i_ref, b2i_ref,          # fdca id-branch MLP
                     w1p_ref, b1p_ref, w2p_ref, b2p_ref,          # fdca po-branch MLP
                     oid_ref, opo_ref,
                     *, fdca_num, resca, hw):
    nb, _, cin = xid_ref.shape
    cout = oid_ref.shape[2]

    wei, bei = wei_ref[...], bei_ref[...]
    wep, bep = wep_ref[...], bep_ref[...]
    w1i, b1i, w2i, b2i = w1i_ref[...], b1i_ref[...], w2i_ref[...], b2i_ref[...]
    w1p, b1p, w2p, b2p = w1p_ref[...], b1p_ref[...], w2p_ref[...], b2p_ref[...]

    def extract(x_ref, w, b):
        # 1x1 conv + ReLU over every pixel of the batch tile in one MXU pass:
        # (NB*HW, Cin) @ (Cin, Cout) -> (NB, HW, Cout) f32
        x = x_ref[...].reshape(nb * hw, cin).astype(jnp.float32)
        y = jnp.dot(x, w, preferred_element_type=jnp.float32) + b
        return jnp.maximum(y, 0.0).reshape(nb, hw, cout)

    x_id = extract(xid_ref, wei, bei)
    x_po = extract(xpo_ref, wep, bep)

    def chan_attn(src, w1, b1, w2, b2):
        # per-image GAP -> SE MLP -> sigmoid channel scale, shape (NB, 1, Cout)
        g = jnp.mean(src, axis=1)                                          # (NB, C)
        h = jnp.maximum(jnp.dot(g, w1, preferred_element_type=jnp.float32) + b1, 0.0)
        s = jax.nn.sigmoid(jnp.dot(h, w2, preferred_element_type=jnp.float32) + b2)
        return s[:, None, :]

    if fdca_num > 0 and resca:
        res_id, res_po = x_id, x_po

    # fdca copies (identical weights at init -> Python-unrolled, same refs each iter)
    for _ in range(fdca_num):
        s_id = chan_attn(x_po, w1i, b1i, w2i, b2i)     # id scaled by attention on po
        s_po = chan_attn(x_id, w1p, b1p, w2p, b2p)     # po scaled by attention on id
        x_id = x_id * s_id
        x_po = x_po * s_po

    if fdca_num > 0 and resca:
        # res_id,_ = resca_id(res_id, x_po);  x_id = relu(x_id + res_id)
        x_id = jnp.maximum(
            x_id + res_id * chan_attn(x_po, w1i, b1i, w2i, b2i), 0.0)
        # _,res_po = resca_po(x_id, res_po);  x_po = relu(x_po + res_po)  (updated x_id)
        x_po = jnp.maximum(
            x_po + res_po * chan_attn(x_id, w1p, b1p, w2p, b2p), 0.0)

    oid_ref[...] = x_id.astype(oid_ref.dtype)
    opo_ref[...] = x_po.astype(opo_ref.dtype)


# ------------------------------ wrapper --------------------------------------

def _pick_batch_tile(n, hw, cin, cout, in_itemsize, out_itemsize,
                     vmem_budget_bytes=32 << 20):
    """Largest divisor of n whose per-step footprint fits a conservative VMEM budget
    (budget sized so the same tiling is safe on v7x's 64 MiB VMEM)."""
    per_img = hw * (cin * in_itemsize * 4        # 2 input streams, double-buffered
                    + cout * out_itemsize * 4    # 2 output streams, double-buffered
                    + cout * 4 * 6)              # ~6 live f32 activation tensors
    nb = max(1, min(n, vmem_budget_bytes // max(per_img, 1)))
    while n % nb:
        nb -= 1
    return nb


def fd_block_forward(x_id, x_po, params, *, fdca_num=2, resca=True,
                     batch_tile=None, out_dtype=None):
    """x_id, x_po: (N, H*W, C_in) channels-last activations.

    NCHW callers should fold the NCHW->NHWC transpose into the op that produces
    these activations rather than paying two extra HBM passes here.
    """
    n, hw, cin = x_id.shape
    cout = params["w_ext_id"].shape[1]
    out_dtype = out_dtype or x_id.dtype

    if batch_tile is None:
        batch_tile = _pick_batch_tile(
            n, hw, cin, cout,
            jnp.dtype(x_id.dtype).itemsize, jnp.dtype(out_dtype).itemsize)
    nb = batch_tile
    assert n % nb == 0, "batch_tile must divide N"

    fd = params["fdca"]
    weights = (params["w_ext_id"], params["b_ext_id"],
               params["w_ext_po"], params["b_ext_po"],
               fd["w1i"], fd["b1i"], fd["w2i"], fd["b2i"],
               fd["w1p"], fd["b1p"], fd["w2p"], fd["b2p"])

    act_in = pl.BlockSpec((nb, hw, cin), lambda b: (b, 0, 0))
    act_out = pl.BlockSpec((nb, hw, cout), lambda b: (b, 0, 0))
    w_specs = [pl.BlockSpec(w.shape, lambda b: (0, 0)) for w in weights]

    kern = functools.partial(_fd_block_kernel,
                             fdca_num=fdca_num, resca=resca, hw=hw)

    out_id, out_po = pl.pallas_call(
        kern,
        out_shape=(jax.ShapeDtypeStruct((n, hw, cout), out_dtype),
                   jax.ShapeDtypeStruct((n, hw, cout), out_dtype)),
        grid=(n // nb,),
        in_specs=[act_in, act_in] + w_specs,
        out_specs=(act_out, act_out),
        compiler_params=pltpu.CompilerParams(
            dimension_semantics=("parallel",),       # batch tiles are independent
            vmem_limit_bytes=48 << 20),              # headroom even on v7x (64 MiB)
    )(x_id, x_po, *weights)
    return out_id, out_po


# ------------------------------ reference (pure JAX) --------------------------

def fd_block_reference(x_id, x_po, params, *, fdca_num=2, resca=True):
    def ext(x, w, b):
        return jnp.maximum(jnp.einsum("nsc,cd->nsd", x, w) + b, 0.0)

    def attn(src, w1, b1, w2, b2):
        g = jnp.mean(src, axis=1)
        h = jnp.maximum(g @ w1 + b1, 0.0)
        return jax.nn.sigmoid(h @ w2 + b2)[:, None, :]

    fd = params["fdca"]
    x_id = ext(x_id, params["w_ext_id"], params["b_ext_id"])
    x_po = ext(x_po, params["w_ext_po"], params["b_ext_po"])
    if fdca_num > 0 and resca:
        r_id, r_po = x_id, x_po
    for _ in range(fdca_num):
        s_id = attn(x_po, fd["w1i"], fd["b1i"], fd["w2i"], fd["b2i"])
        s_po = attn(x_id, fd["w1p"], fd["b1p"], fd["w2p"], fd["b2p"])
        x_id, x_po = x_id * s_id, x_po * s_po
    if fdca_num > 0 and resca:
        x_id = jnp.maximum(
            x_id + r_id * attn(x_po, fd["w1i"], fd["b1i"], fd["w2i"], fd["b2i"]), 0.0)
        x_po = jnp.maximum(
            x_po + r_po * attn(x_id, fd["w1p"], fd["b1p"], fd["w2p"], fd["b2p"]), 0.0)
    return x_id, x_po


# ------------------------------ deterministic params --------------------------

def init_params(key, c_in, c_out, reduction=4):
    cr = c_out // reduction
    ks = jax.random.split(key, 8)
    s = 0.1
    return {
        "w_ext_id": s * jax.random.normal(ks[0], (c_in, c_out), jnp.float32),
        "b_ext_id": s * jax.random.normal(ks[1], (1, c_out), jnp.float32),
        "w_ext_po": s * jax.random.normal(ks[2], (c_in, c_out), jnp.float32),
        "b_ext_po": s * jax.random.normal(ks[3], (1, c_out), jnp.float32),
        "fdca": {
            "w1i": s * jax.random.normal(ks[4], (c_out, cr), jnp.float32),
            "b1i": jnp.zeros((1, cr), jnp.float32),
            "w2i": s * jax.random.normal(ks[5], (cr, c_out), jnp.float32),
            "b2i": jnp.zeros((1, c_out), jnp.float32),
            "w1p": s * jax.random.normal(ks[6], (c_out, cr), jnp.float32),
            "b1p": jnp.zeros((1, cr), jnp.float32),
            "w2p": s * jax.random.normal(ks[7], (cr, c_out), jnp.float32),
            "b2p": jnp.zeros((1, c_out), jnp.float32),
        },
    }


if __name__ == "__main__":
    key = jax.random.PRNGKey(0)
    k_id, k_po, k_params = jax.random.split(key, 3)

    N, C_IN, H, W = 2, 16, 8, 8
    C_OUT = 128                      # lane-dense channel dim (multiple of 128)
    HW = H * W                       # NB*HW = 128 -> full MXU M dimension

    # channels-last (N, H*W, C) activations
    x_id = jax.random.normal(k_id, (N, HW, C_IN), jnp.float32)
    x_po = jax.random.normal(k_po, (N, HW, C_IN), jnp.float32)

    params = init_params(k_params, C_IN, C_OUT)

    fwd = jax.jit(functools.partial(fd_block_forward, fdca_num=2, resca=True))
    out_id, out_po = fwd(x_id, x_po, params)
    jax.block_until_ready(out_id)
    jax.block_until_ready(out_po)

    assert out_id.shape == (N, HW, C_OUT)
    assert out_po.shape == (N, HW, C_OUT)

    ref_id, ref_po = fd_block_reference(x_id, x_po, params, fdca_num=2, resca=True)
    assert jnp.allclose(out_id, ref_id, rtol=1e-3, atol=1e-3)
    assert jnp.allclose(out_po, ref_po, rtol=1e-3, atol=1e-3)

    print("KERNEL_OK")
</pallas_src>

<mosaic_0001>
module attributes {stable_mosaic.version = 11 : i64} {
  func.func @_fd_block_kernel(%arg0: i32, %arg1: memref<2x64x16xf32, #tpu.memory_space<vmem>>, %arg2: memref<2x64x16xf32, #tpu.memory_space<vmem>>, %arg3: memref<16x128xf32, #tpu.memory_space<vmem>>, %arg4: memref<1x128xf32, #tpu.memory_space<vmem>>, %arg5: memref<16x128xf32, #tpu.memory_space<vmem>>, %arg6: memref<1x128xf32, #tpu.memory_space<vmem>>, %arg7: memref<128x32xf32, #tpu.memory_space<vmem>>, %arg8: memref<1x32xf32, #tpu.memory_space<vmem>>, %arg9: memref<32x128xf32, #tpu.memory_space<vmem>>, %arg10: memref<1x128xf32, #tpu.memory_space<vmem>>, %arg11: memref<128x32xf32, #tpu.memory_space<vmem>>, %arg12: memref<1x32xf32, #tpu.memory_space<vmem>>, %arg13: memref<32x128xf32, #tpu.memory_space<vmem>>, %arg14: memref<1x128xf32, #tpu.memory_space<vmem>>, %arg15: memref<2x64x128xf32, #tpu.memory_space<vmem>>, %arg16: memref<2x64x128xf32, #tpu.memory_space<vmem>>) attributes {dimension_semantics = [#tpu.dimension_semantics<parallel>], iteration_bounds = array<i64: 1>, scalar_prefetch = 0 : i64, scratch_operands = 0 : i64, tpu.core_type = #tpu.core_type<tc>, window_params = [{transform_indices = @transform_0, window_bounds = array<i64: 2, 64, 16>}, {transform_indices = @transform_1, window_bounds = array<i64: 2, 64, 16>}, {pipeline_mode = #tpu.pipeline_mode<synchronous>, transform_indices = @transform_2, window_bounds = array<i64: 16, 128>}, {pipeline_mode = #tpu.pipeline_mode<synchronous>, transform_indices = @transform_3, window_bounds = array<i64: 1, 128>}, {pipeline_mode = #tpu.pipeline_mode<synchronous>, transform_indices = @transform_4, window_bounds = array<i64: 16, 128>}, {pipeline_mode = #tpu.pipeline_mode<synchronous>, transform_indices = @transform_5, window_bounds = array<i64: 1, 128>}, {pipeline_mode = #tpu.pipeline_mode<synchronous>, transform_indices = @transform_6, window_bounds = array<i64: 128, 32>}, {pipeline_mode = #tpu.pipeline_mode<synchronous>, transform_indices = @transform_7, window_bounds = array<i64: 1, 32>}, {pipeline_mode = #tpu.pipeline_mode<synchronous>, transform_indices = @transform_8, window_bounds = array<i64: 32, 128>}, {pipeline_mode = #tpu.pipeline_mode<synchronous>, transform_indices = @transform_9, window_bounds = array<i64: 1, 128>}, {pipeline_mode = #tpu.pipeline_mode<synchronous>, transform_indices = @transform_10, window_bounds = array<i64: 128, 32>}, {pipeline_mode = #tpu.pipeline_mode<synchronous>, transform_indices = @transform_11, window_bounds = array<i64: 1, 32>}, {pipeline_mode = #tpu.pipeline_mode<synchronous>, transform_indices = @transform_12, window_bounds = array<i64: 32, 128>}, {pipeline_mode = #tpu.pipeline_mode<synchronous>, transform_indices = @transform_13, window_bounds = array<i64: 1, 128>}, {transform_indices = @transform_14, window_bounds = array<i64: 2, 64, 128>}, {transform_indices = @transform_15, window_bounds = array<i64: 2, 64, 128>}]} {
    %c0 = arith.constant 0 : index
    %c0_0 = arith.constant 0 : index
    %0 = vector.load %arg3[%c0, %c0_0] : memref<16x128xf32, #tpu.memory_space<vmem>>, vector<16x128xf32>
    %c0_1 = arith.constant 0 : index
    %c0_2 = arith.constant 0 : index
    %1 = vector.load %arg4[%c0_1, %c0_2] : memref<1x128xf32, #tpu.memory_space<vmem>>, vector<1x128xf32>
    %c0_3 = arith.constant 0 : index
    %c0_4 = arith.constant 0 : index
    %2 = vector.load %arg5[%c0_3, %c0_4] : memref<16x128xf32, #tpu.memory_space<vmem>>, vector<16x128xf32>
    %c0_5 = arith.constant 0 : index
    %c0_6 = arith.constant 0 : index
    %3 = vector.load %arg6[%c0_5, %c0_6] : memref<1x128xf32, #tpu.memory_space<vmem>>, vector<1x128xf32>
    %c0_7 = arith.constant 0 : index
    %c0_8 = arith.constant 0 : index
    %4 = vector.load %arg7[%c0_7, %c0_8] : memref<128x32xf32, #tpu.memory_space<vmem>>, vector<128x32xf32>
    %c0_9 = arith.constant 0 : index
    %c0_10 = arith.constant 0 : index
    %5 = vector.load %arg8[%c0_9, %c0_10] : memref<1x32xf32, #tpu.memory_space<vmem>>, vector<1x32xf32>
    %c0_11 = arith.constant 0 : index
    %c0_12 = arith.constant 0 : index
    %6 = vector.load %arg9[%c0_11, %c0_12] : memref<32x128xf32, #tpu.memory_space<vmem>>, vector<32x128xf32>
    %c0_13 = arith.constant 0 : index
    %c0_14 = arith.constant 0 : index
    %7 = vector.load %arg10[%c0_13, %c0_14] : memref<1x128xf32, #tpu.memory_space<vmem>>, vector<1x128xf32>
    %c0_15 = arith.constant 0 : index
    %c0_16 = arith.constant 0 : index
    %8 = vector.load %arg11[%c0_15, %c0_16] : memref<128x32xf32, #tpu.memory_space<vmem>>, vector<128x32xf32>
    %c0_17 = arith.constant 0 : index
    %c0_18 = arith.constant 0 : index
    %9 = vector.load %arg12[%c0_17, %c0_18] : memref<1x32xf32, #tpu.memory_space<vmem>>, vector<1x32xf32>
    %c0_19 = arith.constant 0 : index
    %c0_20 = arith.constant 0 : index
    %10 = vector.load %arg13[%c0_19, %c0_20] : memref<32x128xf32, #tpu.memory_space<vmem>>, vector<32x128xf32>
    %c0_21 = arith.constant 0 : index
    %c0_22 = arith.constant 0 : index
    %11 = vector.load %arg14[%c0_21, %c0_22] : memref<1x128xf32, #tpu.memory_space<vmem>>, vector<1x128xf32>
    %c0_23 = arith.constant 0 : index
    %c0_24 = arith.constant 0 : index
    %c0_25 = arith.constant 0 : index
    %12 = vector.load %arg1[%c0_23, %c0_24, %c0_25] : memref<2x64x16xf32, #tpu.memory_space<vmem>>, vector<2x64x16xf32>
    %13 = vector.shape_cast %12 : vector<2x64x16xf32> to vector<128x16xf32>
    %cst = arith.constant dense<0.000000e+00> : vector<128x128xf32>
    %14 = tpu.matmul %13, %0, %cst {dimension_numbers = #tpu.dot_dimension_numbers<[1], [0], [0], [1], [0, 0, 1, 1], [], []>} : vector<128x16xf32>, vector<16x128xf32>, vector<128x128xf32> -> vector<128x128xf32>
    %15 = vector.broadcast %1 : vector<1x128xf32> to vector<128x128xf32>
    %16 = arith.addf %14, %15 : vector<128x128xf32>
    %cst_26 = arith.constant 0.000000e+00 : f32
    %17 = vector.broadcast %cst_26 : f32 to vector<128x128xf32>
    %18 = arith.maximumf %16, %17 : vector<128x128xf32>
    %19 = vector.shape_cast %18 : vector<128x128xf32> to vector<2x64x128xf32>
    %c0_27 = arith.constant 0 : index
    %c0_28 = arith.constant 0 : index
    %c0_29 = arith.constant 0 : index
    %20 = vector.load %arg2[%c0_27, %c0_28, %c0_29] : memref<2x64x16xf32, #tpu.memory_space<vmem>>, vector<2x64x16xf32>
    %21 = vector.shape_cast %20 : vector<2x64x16xf32> to vector<128x16xf32>
    %cst_30 = arith.constant dense<0.000000e+00> : vector<128x128xf32>
    %22 = tpu.matmul %21, %2, %cst_30 {dimension_numbers = #tpu.dot_dimension_numbers<[1], [0], [0], [1], [0, 0, 1, 1], [], []>} : vector<128x16xf32>, vector<16x128xf32>, vector<128x128xf32> -> vector<128x128xf32>
    %23 = vector.broadcast %3 : vector<1x128xf32> to vector<128x128xf32>
    %24 = arith.addf %22, %23 : vector<128x128xf32>
    %cst_31 = arith.constant 0.000000e+00 : f32
    %25 = vector.broadcast %cst_31 : f32 to vector<128x128xf32>
    %26 = arith.maximumf %24, %25 : vector<128x128xf32>
    %27 = vector.shape_cast %26 : vector<128x128xf32> to vector<2x64x128xf32>
    %cst_32 = arith.constant dense<0.000000e+00> : vector<2x128xf32>
    %28 = vector.multi_reduction <add>, %27, %cst_32 [1] : vector<2x64x128xf32> to vector<2x128xf32>
    %cst_33 = arith.constant 6.400000e+01 : f32
    %29 = vector.broadcast %cst_33 : f32 to vector<2x128xf32>
    %30 = arith.divf %28, %29 : vector<2x128xf32>
    %cst_34 = arith.constant dense<0.000000e+00> : vector<2x32xf32>
    %31 = tpu.matmul %30, %4, %cst_34 {dimension_numbers = #tpu.dot_dimension_numbers<[1], [0], [0], [1], [0, 0, 1, 1], [], []>} : vector<2x128xf32>, vector<128x32xf32>, vector<2x32xf32> -> vector<2x32xf32>
    %32 = vector.broadcast %5 : vector<1x32xf32> to vector<2x32xf32>
    %33 = arith.addf %31, %32 : vector<2x32xf32>
    %cst_35 = arith.constant 0.000000e+00 : f32
    %34 = vector.broadcast %cst_35 : f32 to vector<2x32xf32>
    %35 = arith.maximumf %33, %34 : vector<2x32xf32>
    %cst_36 = arith.constant dense<0.000000e+00> : vector<2x128xf32>
    %36 = tpu.matmul %35, %6, %cst_36 {dimension_numbers = #tpu.dot_dimension_numbers<[1], [0], [0], [1], [0, 0, 1, 1], [], []>} : vector<2x32xf32>, vector<32x128xf32>, vector<2x128xf32> -> vector<2x128xf32>
    %37 = vector.broadcast %7 : vector<1x128xf32> to vector<2x128xf32>
    %38 = arith.addf %36, %37 : vector<2x128xf32>
    %39 = arith.negf %38 : vector<2x128xf32>
    %40 = math.exp %39 : vector<2x128xf32>
    %cst_37 = arith.constant 1.000000e+00 : f32
    %41 = vector.broadcast %cst_37 : f32 to vector<2x128xf32>
    %42 = arith.addf %41, %40 : vector<2x128xf32>
    %43 = arith.divf %41, %42 : vector<2x128xf32>
    %44 = vector.shape_cast %43 : vector<2x128xf32> to vector<2x1x128xf32>
    %cst_38 = arith.constant dense<0.000000e+00> : vector<2x128xf32>
    %45 = vector.multi_reduction <add>, %19, %cst_38 [1] : vector<2x64x128xf32> to vector<2x128xf32>
    %cst_39 = arith.constant 6.400000e+01 : f32
    %46 = vector.broadcast %cst_39 : f32 to vector<2x128xf32>
    %47 = arith.divf %45, %46 : vector<2x128xf32>
    %cst_40 = arith.constant dense<0.000000e+00> : vector<2x32xf32>
    %48 = tpu.matmul %47, %8, %cst_40 {dimension_numbers = #tpu.dot_dimension_numbers<[1], [0], [0], [1], [0, 0, 1, 1], [], []>} : vector<2x128xf32>, vector<128x32xf32>, vector<2x32xf32> -> vector<2x32xf32>
    %49 = vector.broadcast %9 : vector<1x32xf32> to vector<2x32xf32>
    %50 = arith.addf %48, %49 : vector<2x32xf32>
    %cst_41 = arith.constant 0.000000e+00 : f32
    %51 = vector.broadcast %cst_41 : f32 to vector<2x32xf32>
    %52 = arith.maximumf %50, %51 : vector<2x32xf32>
    %cst_42 = arith.constant dense<0.000000e+00> : vector<2x128xf32>
    %53 = tpu.matmul %52, %10, %cst_42 {dimension_numbers = #tpu.dot_dimension_numbers<[1], [0], [0], [1], [0, 0, 1, 1], [], []>} : vector<2x32xf32>, vector<32x128xf32>, vector<2x128xf32> -> vector<2x128xf32>
    %54 = vector.broadcast %11 : vector<1x128xf32> to vector<2x128xf32>
    %55 = arith.addf %53, %54 : vector<2x128xf32>
    %56 = arith.negf %55 : vector<2x128xf32>
    %57 = math.exp %56 : vector<2x128xf32>
    %cst_43 = arith.constant 1.000000e+00 : f32
    %58 = vector.broadcast %cst_43 : f32 to vector<2x128xf32>
    %59 = arith.addf %58, %57 : vector<2x128xf32>
    %60 = arith.divf %58, %59 : vector<2x128xf32>
    %61 = vector.shape_cast %60 : vector<2x128xf32> to vector<2x1x128xf32>
    %62 = vector.broadcast %44 : vector<2x1x128xf32> to vector<2x64x128xf32>
    %63 = arith.mulf %19, %62 : vector<2x64x128xf32>
    %64 = vector.broadcast %61 : vector<2x1x128xf32> to vector<2x64x128xf32>
    %65 = arith.mulf %27, %64 : vector<2x64x128xf32>
    %cst_44 = arith.constant dense<0.000000e+00> : vector<2x128xf32>
    %66 = vector.multi_reduction <add>, %65, %cst_44 [1] : vector<2x64x128xf32> to vector<2x128xf32>
    %cst_45 = arith.constant 6.400000e+01 : f32
    %67 = vector.broadcast %cst_45 : f32 to vector<2x128xf32>
    %68 = arith.divf %66, %67 : vector<2x128xf32>
    %cst_46 = arith.constant dense<0.000000e+00> : vector<2x32xf32>
    %69 = tpu.matmul %68, %4, %cst_46 {dimension_numbers = #tpu.dot_dimension_numbers<[1], [0], [0], [1], [0, 0, 1, 1], [], []>} : vector<2x128xf32>, vector<128x32xf32>, vector<2x32xf32> -> vector<2x32xf32>
    %70 = vector.broadcast %5 : vector<1x32xf32> to vector<2x32xf32>
    %71 = arith.addf %69, %70 : vector<2x32xf32>
    %cst_47 = arith.constant 0.000000e+00 : f32
    %72 = vector.broadcast %cst_47 : f32 to vector<2x32xf32>
    %73 = arith.maximumf %71, %72 : vector<2x32xf32>
    %cst_48 = arith.constant dense<0.000000e+00> : vector<2x128xf32>
    %74 = tpu.matmul %73, %6, %cst_48 {dimension_numbers = #tpu.dot_dimension_numbers<[1], [0], [0], [1], [0, 0, 1, 1], [], []>} : vector<2x32xf32>, vector<32x128xf32>, vector<2x128xf32> -> vector<2x128xf32>
    %75 = vector.broadcast %7 : vector<1x128xf32> to vector<2x128xf32>
    %76 = arith.addf %74, %75 : vector<2x128xf32>
    %77 = arith.negf %76 : vector<2x128xf32>
    %78 = math.exp %77 : vector<2x128xf32>
    %cst_49 = arith.constant 1.000000e+00 : f32
    %79 = vector.broadcast %cst_49 : f32 to vector<2x128xf32>
    %80 = arith.addf %79, %78 : vector<2x128xf32>
    %81 = arith.divf %79, %80 : vector<2x128xf32>
    %82 = vector.shape_cast %81 : vector<2x128xf32> to vector<2x1x128xf32>
    %cst_50 = arith.constant dense<0.000000e+00> : vector<2x128xf32>
    %83 = vector.multi_reduction <add>, %63, %cst_50 [1] : vector<2x64x128xf32> to vector<2x128xf32>
    %cst_51 = arith.constant 6.400000e+01 : f32
    %84 = vector.broadcast %cst_51 : f32 to vector<2x128xf32>
    %85 = arith.divf %83, %84 : vector<2x128xf32>
    %cst_52 = arith.constant dense<0.000000e+00> : vector<2x32xf32>
    %86 = tpu.matmul %85, %8, %cst_52 {dimension_numbers = #tpu.dot_dimension_numbers<[1], [0], [0], [1], [0, 0, 1, 1], [], []>} : vector<2x128xf32>, vector<128x32xf32>, vector<2x32xf32> -> vector<2x32xf32>
    %87 = vector.broadcast %9 : vector<1x32xf32> to vector<2x32xf32>
    %88 = arith.addf %86, %87 : vector<2x32xf32>
    %cst_53 = arith.constant 0.000000e+00 : f32
    %89 = vector.broadcast %cst_53 : f32 to vector<2x32xf32>
    %90 = arith.maximumf %88, %89 : vector<2x32xf32>
    %cst_54 = arith.constant dense<0.000000e+00> : vector<2x128xf32>
    %91 = tpu.matmul %90, %10, %cst_54 {dimension_numbers = #tpu.dot_dimension_numbers<[1], [0], [0], [1], [0, 0, 1, 1], [], []>} : vector<2x32xf32>, vector<32x128xf32>, vector<2x128xf32> -> vector<2x128xf32>
    %92 = vector.broadcast %11 : vector<1x128xf32> to vector<2x128xf32>
    %93 = arith.addf %91, %92 : vector<2x128xf32>
    %94 = arith.negf %93 : vector<2x128xf32>
    %95 = math.exp %94 : vector<2x128xf32>
    %cst_55 = arith.constant 1.000000e+00 : f32
    %96 = vector.broadcast %cst_55 : f32 to vector<2x128xf32>
    %97 = arith.addf %96, %95 : vector<2x128xf32>
    %98 = arith.divf %96, %97 : vector<2x128xf32>
    %99 = vector.shape_cast %98 : vector<2x128xf32> to vector<2x1x128xf32>
    %100 = vector.broadcast %82 : vector<2x1x128xf32> to vector<2x64x128xf32>
    %101 = arith.mulf %63, %100 : vector<2x64x128xf32>
    %102 = vector.broadcast %99 : vector<2x1x128xf32> to vector<2x64x128xf32>
    %103 = arith.mulf %65, %102 : vector<2x64x128xf32>
    %cst_56 = arith.constant dense<0.000000e+00> : vector<2x128xf32>
    %104 = vector.multi_reduction <add>, %103, %cst_56 [1] : vector<2x64x128xf32> to vector<2x128xf32>
    %cst_57 = arith.constant 6.400000e+01 : f32
    %105 = vector.broadcast %cst_57 : f32 to vector<2x128xf32>
    %106 = arith.divf %104, %105 : vector<2x128xf32>
    %cst_58 = arith.constant dense<0.000000e+00> : vector<2x32xf32>
    %107 = tpu.matmul %106, %4, %cst_58 {dimension_numbers = #tpu.dot_dimension_numbers<[1], [0], [0], [1], [0, 0, 1, 1], [], []>} : vector<2x128xf32>, vector<128x32xf32>, vector<2x32xf32> -> vector<2x32xf32>
    %108 = vector.broadcast %5 : vector<1x32xf32> to vector<2x32xf32>
    %109 = arith.addf %107, %108 : vector<2x32xf32>
    %cst_59 = arith.constant 0.000000e+00 : f32
    %110 = vector.broadcast %cst_59 : f32 to vector<2x32xf32>
    %111 = arith.maximumf %109, %110 : vector<2x32xf32>
    %cst_60 = arith.constant dense<0.000000e+00> : vector<2x128xf32>
    %112 = tpu.matmul %111, %6, %cst_60 {dimension_numbers = #tpu.dot_dimension_numbers<[1], [0], [0], [1], [0, 0, 1, 1], [], []>} : vector<2x32xf32>, vector<32x128xf32>, vector<2x128xf32> -> vector<2x128xf32>
    %113 = vector.broadcast %7 : vector<1x128xf32> to vector<2x128xf32>
    %114 = arith.addf %112, %113 : vector<2x128xf32>
    %115 = arith.negf %114 : vector<2x128xf32>
    %116 = math.exp %115 : vector<2x128xf32>
    %cst_61 = arith.constant 1.000000e+00 : f32
    %117 = vector.broadcast %cst_61 : f32 to vector<2x128xf32>
    %118 = arith.addf %117, %116 : vector<2x128xf32>
    %119 = arith.divf %117, %118 : vector<2x128xf32>
    %120 = vector.shape_cast %119 : vector<2x128xf32> to vector<2x1x128xf32>
    %121 = vector.broadcast %120 : vector<2x1x128xf32> to vector<2x64x128xf32>
    %122 = arith.mulf %19, %121 : vector<2x64x128xf32>
    %123 = arith.addf %101, %122 : vector<2x64x128xf32>
    %cst_62 = arith.constant 0.000000e+00 : f32
    %124 = vector.broadcast %cst_62 : f32 to vector<2x64x128xf32>
    %125 = arith.maximumf %123, %124 : vector<2x64x128xf32>
    %cst_63 = arith.constant dense<0.000000e+00> : vector<2x128xf32>
    %126 = vector.multi_reduction <add>, %125, %cst_63 [1] : vector<2x64x128xf32> to vector<2x128xf32>
    %cst_64 = arith.constant 6.400000e+01 : f32
    %127 = vector.broadcast %cst_64 : f32 to vector<2x128xf32>
    %128 = arith.divf %126, %127 : vector<2x128xf32>
    %cst_65 = arith.constant dense<0.000000e+00> : vector<2x32xf32>
    %129 = tpu.matmul %128, %8, %cst_65 {dimension_numbers = #tpu.dot_dimension_numbers<[1], [0], [0], [1], [0, 0, 1, 1], [], []>} : vector<2x128xf32>, vector<128x32xf32>, vector<2x32xf32> -> vector<2x32xf32>
    %130 = vector.broadcast %9 : vector<1x32xf32> to vector<2x32xf32>
    %131 = arith.addf %129, %130 : vector<2x32xf32>
    %cst_66 = arith.constant 0.000000e+00 : f32
    %132 = vector.broadcast %cst_66 : f32 to vector<2x32xf32>
    %133 = arith.maximumf %131, %132 : vector<2x32xf32>
    %cst_67 = arith.constant dense<0.000000e+00> : vector<2x128xf32>
    %134 = tpu.matmul %133, %10, %cst_67 {dimension_numbers = #tpu.dot_dimension_numbers<[1], [0], [0], [1], [0, 0, 1, 1], [], []>} : vector<2x32xf32>, vector<32x128xf32>, vector<2x128xf32> -> vector<2x128xf32>
    %135 = vector.broadcast %11 : vector<1x128xf32> to vector<2x128xf32>
    %136 = arith.addf %134, %135 : vector<2x128xf32>
    %137 = arith.negf %136 : vector<2x128xf32>
    %138 = math.exp %137 : vector<2x128xf32>
    %cst_68 = arith.constant 1.000000e+00 : f32
    %139 = vector.broadcast %cst_68 : f32 to vector<2x128xf32>
    %140 = arith.addf %139, %138 : vector<2x128xf32>
    %141 = arith.divf %139, %140 : vector<2x128xf32>
    %142 = vector.shape_cast %141 : vector<2x128xf32> to vector<2x1x128xf32>
    %143 = vector.broadcast %142 : vector<2x1x128xf32> to vector<2x64x128xf32>
    %144 = arith.mulf %27, %143 : vector<2x64x128xf32>
    %145 = arith.addf %103, %144 : vector<2x64x128xf32>
    %cst_69 = arith.constant 0.000000e+00 : f32
    %146 = vector.broadcast %cst_69 : f32 to vector<2x64x128xf32>
    %147 = arith.maximumf %145, %146 : vector<2x64x128xf32>
    %c0_70 = arith.constant 0 : index
    %c0_71 = arith.constant 0 : index
    %c0_72 = arith.constant 0 : index
    %148 = vector.load %arg15[%c0_70, %c0_71, %c0_72] : memref<2x64x128xf32, #tpu.memory_space<vmem>>, vector<2x64x128xf32>
    tpu.vector_store %arg15[%c0_70, %c0_71, %c0_72], %125 {strides = array<i32>} : memref<2x64x128xf32, #tpu.memory_space<vmem>>, vector<2x64x128xf32>,
    %c0_73 = arith.constant 0 : index
    %c0_74 = arith.constant 0 : index
    %c0_75 = arith.constant 0 : index
    %149 = vector.load %arg16[%c0_73, %c0_74, %c0_75] : memref<2x64x128xf32, #tpu.memory_space<vmem>>, vector<2x64x128xf32>
    tpu.vector_store %arg16[%c0_73, %c0_74, %c0_75], %147 {strides = array<i32>} : memref<2x64x128xf32, #tpu.memory_space<vmem>>, vector<2x64x128xf32>,
    return
  }
  func.func @transform_0(%arg0: i32) -> (i32, i32, i32) {
    %c0_i32 = arith.constant 0 : i32
    %c0_i32_0 = arith.constant 0 : i32
    %c0_i32_1 = arith.constant 0 : i32
    return %arg0, %c0_i32, %c0_i32_0 : i32, i32, i32
  }
  func.func @transform_1(%arg0: i32) -> (i32, i32, i32) {
    %c0_i32 = arith.constant 0 : i32
    %c0_i32_0 = arith.constant 0 : i32
    %c0_i32_1 = arith.constant 0 : i32
    return %arg0, %c0_i32, %c0_i32_0 : i32, i32, i32
  }
  func.func @transform_2(%arg0: i32) -> (i32, i32) {
    %c0_i32 = arith.constant 0 : i32
    %c0_i32_0 = arith.constant 0 : i32
    %c0_i32_1 = arith.constant 0 : i32
    return %c0_i32, %c0_i32_0 : i32, i32
  }
  func.func @transform_3(%arg0: i32) -> (i32, i32) {
    %c0_i32 = arith.constant 0 : i32
    %c0_i32_0 = arith.constant 0 : i32
    %c0_i32_1 = arith.constant 0 : i32
    return %c0_i32, %c0_i32_0 : i32, i32
  }
  func.func @transform_4(%arg0: i32) -> (i32, i32) {
    %c0_i32 = arith.constant 0 : i32
    %c0_i32_0 = arith.constant 0 : i32
    %c0_i32_1 = arith.constant 0 : i32
    return %c0_i32, %c0_i32_0 : i32, i32
  }
  func.func @transform_5(%arg0: i32) -> (i32, i32) {
    %c0_i32 = arith.constant 0 : i32
    %c0_i32_0 = arith.constant 0 : i32
    %c0_i32_1 = arith.constant 0 : i32
    return %c0_i32, %c0_i32_0 : i32, i32
  }
  func.func @transform_6(%arg0: i32) -> (i32, i32) {
    %c0_i32 = arith.constant 0 : i32
    %c0_i32_0 = arith.constant 0 : i32
    %c0_i32_1 = arith.constant 0 : i32
    return %c0_i32, %c0_i32_0 : i32, i32
  }
  func.func @transform_7(%arg0: i32) -> (i32, i32) {
    %c0_i32 = arith.constant 0 : i32
    %c0_i32_0 = arith.constant 0 : i32
    %c0_i32_1 = arith.constant 0 : i32
    return %c0_i32, %c0_i32_0 : i32, i32
  }
  func.func @transform_8(%arg0: i32) -> (i32, i32) {
    %c0_i32 = arith.constant 0 : i32
    %c0_i32_0 = arith.constant 0 : i32
    %c0_i32_1 = arith.constant 0 : i32
    return %c0_i32, %c0_i32_0 : i32, i32
  }
  func.func @transform_9(%arg0: i32) -> (i32, i32) {
    %c0_i32 = arith.constant 0 : i32
    %c0_i32_0 = arith.constant 0 : i32
    %c0_i32_1 = arith.constant 0 : i32
    return %c0_i32, %c0_i32_0 : i32, i32
  }
  func.func @transform_10(%arg0: i32) -> (i32, i32) {
    %c0_i32 = arith.constant 0 : i32
    %c0_i32_0 = arith.constant 0 : i32
    %c0_i32_1 = arith.constant 0 : i32
    return %c0_i32, %c0_i32_0 : i32, i32
  }
  func.func @transform_11(%arg0: i32) -> (i32, i32) {
    %c0_i32 = arith.constant 0 : i32
    %c0_i32_0 = arith.constant 0 : i32
    %c0_i32_1 = arith.constant 0 : i32
    return %c0_i32, %c0_i32_0 : i32, i32
  }
  func.func @transform_12(%arg0: i32) -> (i32, i32) {
    %c0_i32 = arith.constant 0 : i32
    %c0_i32_0 = arith.constant 0 : i32
    %c0_i32_1 = arith.constant 0 : i32
    return %c0_i32, %c0_i32_0 : i32, i32
  }
  func.func @transform_13(%arg0: i32) -> (i32, i32) {
    %c0_i32 = arith.constant 0 : i32
    %c0_i32_0 = arith.constant 0 : i32
    %c0_i32_1 = arith.constant 0 : i32
    return %c0_i32, %c0_i32_0 : i32, i32
  }
  func.func @transform_14(%arg0: i32) -> (i32, i32, i32) {
    %c0_i32 = arith.constant 0 : i32
    %c0_i32_0 = arith.constant 0 : i32
    %c0_i32_1 = arith.constant 0 : i32
    return %arg0, %c0_i32, %c0_i32_0 : i32, i32, i32
  }
  func.func @transform_15(%arg0: i32) -> (i32, i32, i32) {
    %c0_i32 = arith.constant 0 : i32
    %c0_i32_0 = arith.constant 0 : i32
    %c0_i32_1 = arith.constant 0 : i32
    return %arg0, %c0_i32, %c0_i32_0 : i32, i32, i32
  }
}

</mosaic_0001>

<bundles_post_ra>
// kernel: fd_block_forward.1
= control target key start
LH: loop header
LB: loop body
LE: loop exit
PB: predicated region body
PF: predicated region fallthrough
CT: control target
= control target key end

     0   :  { %21 = vsyncpa [#allocation3], 0  ;;  %vm123_vm0 = vcmask 130048   ;;  %s3963_s0 = inlined_call_operand.vmem [shape: f32[2,64,16], index: 0, kind: input, shape index: {}]   ;;  %s3964_s1 = inlined_call_operand.vmem [shape: f32[2,64,16], index: 1, kind: input, shape index: {}]   ;;  %s3965_s2 = inlined_call_operand.vmem [shape: f32[16,128], index: 2, kind: input, shape index: {}]   ;;  %s3966_s3 = inlined_call_operand.vmem [shape: f32[1,128], index: 3, kind: input, shape index: {}]   ;;  %s3967_s4 = inlined_call_operand.vmem [shape: f32[16,128], index: 4, kind: input, shape index: {}]   ;;  %s3968_s5 = inlined_call_operand.vmem [shape: f32[1,128], index: 5, kind: input, shape index: {}]   ;;  %s3969_s6 = inlined_call_operand.vmem [shape: f32[128,32], index: 6, kind: input, shape index: {}]   ;;  %s3970_s7 = inlined_call_operand.vmem [shape: f32[1,32], index: 7, kind: input, shape index: {}]   ;;  %s3971_s8 = inlined_call_operand.vmem [shape: f32[32,128], index: 8, kind: input, shape index: {}]   ;;  %s3972_s9 = inlined_call_operand.vmem [shape: f32[1,128], index: 9, kind: input, shape index: {}]   ;;  %s3973_s10 = inlined_call_operand.vmem [shape: f32[128,32], index: 10, kind: input, shape index: {}]   ;;  %s3974_s11 = inlined_call_operand.vmem [shape: f32[1,32], index: 11, kind: input, shape index: {}]   ;;  %s3975_s12 = inlined_call_operand.vmem [shape: f32[32,128], index: 12, kind: input, shape index: {}]   ;;  %s3976_s13 = inlined_call_operand.vmem [shape: f32[1,128], index: 13, kind: input, shape index: {}]   ;;  %s3977_s14 = inlined_call_operand.hbm [shape: f32[2,64,128], index: 14, kind: output, shape index: {0}]   ;;  %s3978_s15 = inlined_call_operand.hbm [shape: f32[2,64,128], index: 15, kind: output, shape index: {1}]  }
   0x1   :  { %v51_v0 = vld [vmem:[%s3965_s2] sm:$0xff]  ;;  %v52_v1 = vld [vmem:[%s3965_s2 + $0x8] sm:$0xff]  ;;  %v103_v10 = vld [vmem:[%s3963_s0 + $0x10] sm:$0xff] }
   0x2   :  { %v54_v2 = vld [vmem:[%s3967_s4] sm:$0xff]  ;;  %v2655_v3 = vpack.c.bf16 %v52_v1, %v51_v0  ;;  %v55_v4 = vld [vmem:[%s3967_s4 + $0x8] sm:$0xff]  ;;  %v335_v11 = vld [vmem:[%s3964_s1 + $0x10] sm:$0xff] }
   0x3   :  { %v101_v5 = vld [vmem:[%s3963_s0] sm:$0xff]  ;;  %v2659_v7 = vpack.c.bf16 %v55_v4, %v54_v2  ;;  %v102_v8 = vld [vmem:[%s3963_s0 + $0x8] sm:$0xff]  ;;  %v104_v12 = vld [vmem:[%s3963_s0 + $0x18] sm:$0xff] }
   0x4   :  { %v333_v6 = vld [vmem:[%s3964_s1] sm:$0xff]  ;;  %2327 = vmatprep.mubr.msk.f32.mxu0 %vm123_vm0, %v101_v5  ;;  %2656 = vmatprep.subr.bf16.mxu0 %v2655_v3  ;;  %v334_v9 = vld [vmem:[%s3964_s1 + $0x8] sm:$0xff]  ;;  %v336_v13 = vld [vmem:[%s3964_s1 + $0x18] sm:$0xff] }
   0x5   :  { %2355 = vmatprep.mubr.msk.f32.mxu1 %vm123_vm0, %v333_v6  ;;  %2660 = vmatprep.subr.bf16.mxu1 %v2659_v7  ;;  %v105_v14 = vld [vmem:[%s3963_s0 + $0x20] sm:$0xff]  ;;  %v106_v16 = vld [vmem:[%s3963_s0 + $0x28] sm:$0xff] }
   0x6   :  { %2658 = vmatpush3.bf16.msra.mxu0 %v2655_v3  ;;  %2662 = vmatpush3.bf16.msra.mxu1 %v2659_v7  ;;  %v337_v15 = vld [vmem:[%s3964_s1 + $0x20] sm:$0xff] }
   0x9   :  { %2328 = vmatmul.mubr.msk.f32.vlgmr.msra.gmra.mrb[0].mxu0 %vm123_vm0, %v102_v8  ;;  %2356 = vmatmul.mubr.msk.f32.vlgmr.msra.gmra.mrb[0].mxu1 %vm123_vm0, %v334_v9 }
   0xa   :  { %2330 = vmatprep.mubr.msk.f32.mxu0 %vm123_vm0, %v103_v10  ;;  %2358 = vmatprep.mubr.msk.f32.mxu1 %vm123_vm0, %v335_v11 }
   0xd   :  { %2331 = vmatmul.mubr.msk.f32.gmra.mrb[2].mxu0 %vm123_vm0, %v104_v12  ;;  %2359 = vmatmul.mubr.msk.f32.gmra.mrb[2].mxu1 %vm123_vm0, %v336_v13 }
   0xe   :  { %2333 = vmatprep.mubr.msk.f32.mxu0 %vm123_vm0, %v105_v14 }
   0xf   :  { %22 = vsyncpa [#allocation5], 0  ;;  %2361 = vmatprep.mubr.msk.f32.mxu1 %vm123_vm0, %v337_v15  ;;  %v338_v17 = vld [vmem:[%s3964_s1 + $0x28] sm:$0xff]  ;;  %v107_v18 = vld [vmem:[%s3963_s0 + $0x30] sm:$0xff]  ;;  %v3981_v43 = vmov 0.0|0.0   ;;  %vm2924_vm1 = vmmov 0  }
  0x10   :  { %v339_v19 = vld [vmem:[%s3964_s1 + $0x30] sm:$0xff]  ;;  %v108_v20 = vld [vmem:[%s3963_s0 + $0x38] sm:$0xff]  ;;  %v109_v22 = vld [vmem:[%s3963_s0 + $0x40] sm:$0xff]  ;;  %2693 = vmatprep.subr.bf16.mxu0 %v3981_v43  ;;  %2663 = vmatprep.subr.bf16.mxu1 %v3981_v43  ;;  %vm601_vm2 = vcmask 1041409   ;;  %vm681_vm3 = vcmask 261120  }
  0x11   :  { %2334 = vmatmul.mubr.msk.f32.gmra.mrb[4].mxu0 %vm123_vm0, %v106_v16  ;;  %2362 = vmatmul.mubr.msk.f32.gmra.mrb[4].mxu1 %vm123_vm0, %v338_v17  ;;  %v340_v21 = vld [vmem:[%s3964_s1 + $0x38] sm:$0xff]  ;;  %v341_v23 = vld [vmem:[%s3964_s1 + $0x40] sm:$0xff]  ;;  %v110_v24 = vld [vmem:[%s3963_s0 + $0x48] sm:$0xff] }
  0x12   :  { %2336 = vmatprep.mubr.msk.f32.mxu0 %vm123_vm0, %v107_v18  ;;  %2364 = vmatprep.mubr.msk.f32.mxu1 %vm123_vm0, %v339_v19  ;;  %v342_v25 = vld [vmem:[%s3964_s1 + $0x48] sm:$0xff]  ;;  %v111_v26 = vld [vmem:[%s3963_s0 + $0x50] sm:$0xff]  ;;  %v112_v28 = vld [vmem:[%s3963_s0 + $0x58] sm:$0xff] }
  0x13   :  { %v343_v27 = vld [vmem:[%s3964_s1 + $0x50] sm:$0xff]  ;;  %v344_v29 = vld [vmem:[%s3964_s1 + $0x58] sm:$0xff]  ;;  %v113_v30 = vld [vmem:[%s3963_s0 + $0x60] sm:$0xff] }
  0x14   :  { %v345_v31 = vld [vmem:[%s3964_s1 + $0x60] sm:$0xff]  ;;  %v114_v32 = vld [vmem:[%s3963_s0 + $0x68] sm:$0xff]  ;;  %v115_v34 = vld [vmem:[%s3963_s0 + $0x70] sm:$0xff] }
  0x15   :  { %2337 = vmatmul.mubr.msk.f32.gmra.mrb[6].mxu0 %vm123_vm0, %v108_v20  ;;  %2365 = vmatmul.mubr.msk.f32.gmra.mrb[6].mxu1 %vm123_vm0, %v340_v21  ;;  %v346_v33 = vld [vmem:[%s3964_s1 + $0x68] sm:$0xff]  ;;  %v347_v35 = vld [vmem:[%s3964_s1 + $0x70] sm:$0xff]  ;;  %v116_v36 = vld [vmem:[%s3963_s0 + $0x78] sm:$0xff]  ;;  %v3979_v21 = vmov 0.0  }
  0x16   :  { %2339 = vmatprep.mubr.msk.f32.mxu0 %vm123_vm0, %v109_v22  ;;  %2367 = vmatprep.mubr.msk.f32.mxu1 %vm123_vm0, %v341_v23  ;;  %v348_v37 = vld [vmem:[%s3964_s1 + $0x78] sm:$0xff]  ;;  %v79_v38 = vld [vmem:[%s3973_s10] sm:$0xff]  ;;  %v80_v39 = vld [vmem:[%s3973_s10 + $0x8] sm:$0xff] }
  0x17   :  { %v57_v40 = vld [vmem:[%s3969_s6] sm:$0xff]  ;;  %v3160_v41 = vpack.c.bf16 %v80_v39, %v79_v38  ;;  %v58_v42 = vld [vmem:[%s3969_s6 + $0x8] sm:$0xff]  ;;  %v81_v45 = vld [vmem:[%s3973_s10 + $0x10] sm:$0xff] }
  0x18   :  { %v3167_v44 = vpack.c.bf16 %v58_v42, %v57_v40  ;;  %v82_v46 = vld [vmem:[%s3973_s10 + $0x18] sm:$0xff]  ;;  %v59_v47 = vld [vmem:[%s3969_s6 + $0x10] sm:$0xff]  ;;  %v83_v51 = vld [vmem:[%s3973_s10 + $0x20] sm:$0xff] }
  0x19   :  { %2340 = vmatmul.mubr.msk.f32.gmra.mrb[8].mxu0 %vm123_vm0, %v110_v24  ;;  %2368 = vmatmul.mubr.msk.f32.gmra.mrb[8].mxu1 %vm123_vm0, %v342_v25  ;;  %4047 = vst [vmem:[#allocation8_spill] sm:$0xff] %v3160_v41  ;;  %v3182_v48 = vpack.c.bf16 %v82_v46, %v81_v45  ;;  %v60_v49 = vld [vmem:[%s3969_s6 + $0x18] sm:$0xff]  ;;  %v84_v52 = vld [vmem:[%s3973_s10 + $0x28] sm:$0xff]  ;;  %v61_v53 = vld [vmem:[%s3969_s6 + $0x20] sm:$0xff] }
  0x1a   :  { %2342 = vmatprep.mubr.msk.f32.mxu0 %vm123_vm0, %v111_v26  ;;  %2370 = vmatprep.mubr.msk.f32.mxu1 %vm123_vm0, %v343_v27  ;;  %v3187_v50 = vpack.c.bf16 %v60_v49, %v59_v47  ;;  %v3202_v54 = vpack.c.bf16 %v84_v52, %v83_v51  ;;  %v62_v55 = vld [vmem:[%s3969_s6 + $0x28] sm:$0xff]  ;;  %v85_v57 = vld [vmem:[%s3973_s10 + $0x30] sm:$0xff]  ;;  %v86_v58 = vld [vmem:[%s3973_s10 + $0x38] sm:$0xff] }
  0x1b   :  { %2695 = vmatpush3.bf16.msra.mxu0 %v3160_v41  ;;  %2665 = vmatpush3.bf16.msra.mxu1 %v3167_v44  ;;  %4048 = vst [vmem:[#allocation9_spill] sm:$0xff] %v3182_v48  ;;  %v3207_v56 = vpack.c.bf16 %v62_v55, %v61_v53  ;;  %v63_v59 = vld [vmem:[%s3969_s6 + $0x30] sm:$0xff]  ;;  %v3222_v60 = vpack.c.bf16 %v86_v58, %v85_v57  ;;  %v64_v61 = vld [vmem:[%s3969_s6 + $0x38] sm:$0xff]  ;;  %v87_v63 = vld [vmem:[%s3973_s10 + $0x40] sm:$0xff] }
  0x1c   :  { %2696 = vmatprep.subr.bf16.mxu0 %v3981_v43  ;;  %2666 = vmatprep.subr.bf16.mxu1 %v3981_v43  ;;  %4049 = vst [vmem:[#allocation10_spill] sm:$0xff] %v3202_v54  ;;  %v3227_v62 = vpack.c.bf16 %v64_v61, %v63_v59  ;;  %v88_v0 = vld [vmem:[%s3973_s10 + $0x48] sm:$0xff]  ;;  %v65_v1 = vld [vmem:[%s3969_s6 + $0x40] sm:$0xff]  ;;  %v89_v5 = vld [vmem:[%s3973_s10 + $0x50] sm:$0xff] }
  0x1d   :  { %2343 = vmatmul.mubr.msk.f32.gmra.mrb[10].mxu0 %vm123_vm0, %v112_v28  ;;  %2371 = vmatmul.mubr.msk.f32.gmra.mrb[10].mxu1 %vm123_vm0, %v344_v29  ;;  %4050 = vst [vmem:[#allocation11_spill] sm:$0xff] %v3222_v60  ;;  %v3242_v2 = vpack.c.bf16 %v88_v0, %v87_v63  ;;  %v66_v3 = vld [vmem:[%s3969_s6 + $0x48] sm:$0xff]  ;;  %v90_v6 = vld [vmem:[%s3973_s10 + $0x58] sm:$0xff]  ;;  %v67_v7 = vld [vmem:[%s3969_s6 + $0x50] sm:$0xff] }
  0x1e   :  { %2345 = vmatprep.mubr.msk.f32.mxu0 %vm123_vm0, %v113_v30  ;;  %2373 = vmatprep.mubr.msk.f32.mxu1 %vm123_vm0, %v345_v31  ;;  %v3247_v4 = vpack.c.bf16 %v66_v3, %v65_v1  ;;  %v3262_v8 = vpack.c.bf16 %v90_v6, %v89_v5  ;;  %v68_v9 = vld [vmem:[%s3969_s6 + $0x58] sm:$0xff]  ;;  %v91_v11 = vld [vmem:[%s3973_s10 + $0x60] sm:$0xff]  ;;  %v92_v12 = vld [vmem:[%s3973_s10 + $0x68] sm:$0xff] }
  0x1f   :  { %2698 = vmatpush3.bf16.msra.mxu0 %v3182_v48  ;;  %2668 = vmatpush3.bf16.msra.mxu1 %v3187_v50  ;;  %4051 = vst [vmem:[#allocation12_spill] sm:$0xff] %v3242_v2  ;;  %v3267_v10 = vpack.c.bf16 %v68_v9, %v67_v7  ;;  %v69_v13 = vld [vmem:[%s3969_s6 + $0x60] sm:$0xff]  ;;  %v3282_v14 = vpack.c.bf16 %v92_v12, %v91_v11  ;;  %v70_v15 = vld [vmem:[%s3969_s6 + $0x68] sm:$0xff]  ;;  %v93_v16 = vld [vmem:[%s3973_s10 + $0x70] sm:$0xff] }
  0x20   :  { %2699 = vmatprep.subr.bf16.mxu0 %v3981_v43  ;;  %2669 = vmatprep.subr.bf16.mxu1 %v3981_v43  ;;  %4052 = vst [vmem:[#allocation13_spill] sm:$0xff] %v3262_v8  ;;  %v94_v17 = vld [vmem:[%s3973_s10 + $0x78] sm:$0xff]  ;;  %v3293_v18 = vpack.c.bf16 %v70_v15, %v69_v13  ;;  %v71_v19 = vld [vmem:[%s3969_s6 + $0x70] sm:$0xff]  ;;  %v3320_v24 = vld [vmem:[%s3966_s3] ss:$0 sm:$0xff] }
  0x21   :  { %2346 = vmatmul.mubr.msk.f32.gmra.mrb[12].mxu0 %vm123_vm0, %v114_v32  ;;  %2374 = vmatmul.mubr.msk.f32.gmra.mrb[12].mxu1 %vm123_vm0, %v346_v33  ;;  %4053 = vst [vmem:[#allocation14_spill] sm:$0xff] %v3282_v14  ;;  %v72_v20 = vld [vmem:[%s3969_s6 + $0x78] sm:$0xff]  ;;  %v3306_v22 = vpack.c.bf16 %v94_v17, %v93_v16  ;;  %v3325_v25 = vld [vmem:[%s3968_s5] ss:$0 sm:$0xff] }
  0x22   :  { %2348 = vmatprep.mubr.msk.f32.mxu0 %vm123_vm0, %v115_v34  ;;  %2376 = vmatprep.mubr.msk.f32.mxu1 %vm123_vm0, %v347_v35  ;;  %4054 = vst [vmem:[#allocation15_spill] sm:$0xff] %v3293_v18  ;;  %v3310_v23 = vpack.c.bf16 %v72_v20, %v71_v19 }
  0x23   :  { %2701 = vmatpush3.bf16.msra.mxu0 %v3202_v54  ;;  %2671 = vmatpush3.bf16.msra.mxu1 %v3207_v56  ;;  %4055 = vst [vmem:[#allocation16_spill] sm:$0xff] %v3306_v22 }
  0x24   :  { %2702 = vmatprep.subr.bf16.mxu0 %v3981_v43  ;;  %2672 = vmatprep.subr.bf16.mxu1 %v3981_v43  ;;  %4056 = vst [vmem:[#allocation17_spill] sm:$0xff] %v3310_v23 }
  0x25   :  { %2349 = vmatmul.mubr.msk.f32.gmra.mrb[14].mxu0 %vm123_vm0, %v116_v36  ;;  %2377 = vmatmul.mubr.msk.f32.gmra.mrb[14].mxu1 %vm123_vm0, %v348_v37 }
  0x26   :  { %2411 = vmatprep.mubr.msk.f32.mxu1 %vm2924_vm1, %v3979_v21  ;;  %2457 = vmatprep.mubr.msk.f32.mxu0 %vm2924_vm1, %v3979_v21 }
  0x27   :  { %2704 = vmatpush3.bf16.msra.mxu0 %v3222_v60  ;;  %2674 = vmatpush3.bf16.msra.mxu1 %v3227_v62 }
  0x28   :  { %2705 = vmatprep.subr.bf16.mxu0 %v3981_v43  ;;  %2675 = vmatprep.subr.bf16.mxu1 %v3981_v43 }
  0x2b   :  { %2707 = vmatpush3.bf16.msra.mxu0 %v3242_v2  ;;  %2677 = vmatpush3.bf16.msra.mxu1 %v3247_v4 }
  0x2c   :  { %2708 = vmatprep.subr.bf16.mxu0 %v3981_v43  ;;  %2678 = vmatprep.subr.bf16.mxu1 %v3981_v43 }
  0x2f   :  { %2710 = vmatpush3.bf16.msra.mxu0 %v3262_v8  ;;  %2680 = vmatpush3.bf16.msra.mxu1 %v3267_v10 }
  0x30   :  { %2711 = vmatprep.subr.bf16.mxu0 %v3981_v43  ;;  %2681 = vmatprep.subr.bf16.mxu1 %v3981_v43 }
  0x33   :  { %2713 = vmatpush3.bf16.msra.mxu0 %v3282_v14  ;;  %2683 = vmatpush3.bf16.msra.mxu1 %v3293_v18 }
  0x34   :  { %2714 = vmatprep.subr.bf16.mxu0 %v3981_v43  ;;  %2684 = vmatprep.subr.bf16.mxu1 %v3981_v43 }
  0x37   :  { %2716 = vmatpush3.bf16.msra.mxu0 %v3306_v22  ;;  %2686 = vmatpush3.bf16.msra.mxu1 %v3310_v23 }
  0x38   :  { %2717 = vmatprep.subr.bf16.mxu0 %v3981_v43  ;;  %2687 = vmatprep.subr.bf16.mxu1 %v3981_v43 }
  0xdc   :  { %v2329_v26 = vpop.f32.mrb[0].mxu0  ;;  %v2357_v29 = vpop.f32.mrb[0].mxu1 }
  0xdd   :  { %v244_v27 = vadd.f32 %v2329_v26, %v3320_v24  ;;  %v238_v28 = vpop.f32.mrb[1].mxu0  ;;  %v475_v31 = vadd.f32 %v2357_v29, %v3325_v25  ;;  %v469_v32 = vpop.f32.mrb[1].mxu1 }
  0xde   :  { %v239_v30 = vadd.f32 %v3320_v24, %v238_v28  ;;  %v470_v33 = vadd.f32 %v3325_v25, %v469_v32 }
  0xdf   :  { %v3331_v34 = vmax.f32 %v244_v27, 0.0  ;;  %v3335_v37 = vmax.f32 %v475_v31, 0.0 }
  0xe0   :  { %v3333_v35 = vmax.f32 %v239_v30, 0.0  ;;  %v2332_v36 = vpop.f32.mrb[2].mxu0  ;;  %v3337_v39 = vmax.f32 %v470_v33, 0.0  ;;  %v2360_v40 = vpop.f32.mrb[2].mxu1 }
  0xe1   :  { %4057 = vst [vmem:[#allocation18_spill] sm:$0xff] %v3331_v34  ;;  %4059 = vst [vmem:[#allocation20_spill] sm:$0xff] %v3335_v37  ;;  %v248_v38 = vpop.f32.mrb[3].mxu0  ;;  %v254_v42 = vadd.f32 %v2332_v36, %v3320_v24  ;;  %v485_v46 = vadd.f32 %v2360_v40, %v3325_v25  ;;  %v479_v47 = vpop.f32.mrb[3].mxu1 }
  0xe2   :  { %4058 = vst [vmem:[#allocation19_spill] sm:$0xff] %v3333_v35  ;;  %4060 = vst [vmem:[#allocation21_spill] sm:$0xff] %v3337_v39  ;;  %v249_v45 = vadd.f32 %v3320_v24, %v248_v38  ;;  %v564_v49 = vadd.f32 %v3335_v37, %v3337_v39  ;;  %v480_v51 = vadd.f32 %v3325_v25, %v479_v47 }
  0xe3   :  { %v784_v52 = vadd.f32 %v3331_v34, %v3333_v35  ;;  %v3350_v59 = vmax.f32 %v485_v46, 0.0  ;;  %v3354_v0 = vmax.f32 %v254_v42, 0.0 }
  0xe4   :  { %v3347_v53 = vmax.f32 %v249_v45, 0.0  ;;  %v2335_v55 = vpop.f32.mrb[4].mxu0  ;;  %v3352_v61 = vmax.f32 %v480_v51, 0.0  ;;  %v2363_v63 = vpop.f32.mrb[4].mxu1 }
  0xe5   :  { %v264_v57 = vadd.f32 %v2335_v55, %v3320_v24  ;;  %v258_v58 = vpop.f32.mrb[5].mxu0  ;;  %4062 = vst [vmem:[#allocation23_spill] sm:$0xff] %v3350_v59  ;;  %4064 = vst [vmem:[#allocation25_spill] sm:$0xff] %v3354_v0  ;;  %v495_v5 = vadd.f32 %v2363_v63, %v3325_v25  ;;  %v489_v6 = vpop.f32.mrb[5].mxu1 }
  0xe6   :  { %4061 = vst [vmem:[#allocation22_spill] sm:$0xff] %v3347_v53  ;;  %4063 = vst [vmem:[#allocation24_spill] sm:$0xff] %v3352_v61  ;;  %v785_v1 = vadd.f32 %v784_v52, %v3347_v53  ;;  %v259_v3 = vadd.f32 %v3320_v24, %v258_v58  ;;  %v565_v7 = vadd.f32 %v564_v49, %v3352_v61 }
  0xe7   :  { %v490_v9 = vadd.f32 %v3325_v25, %v489_v6  ;;  %v3364_v15 = vmax.f32 %v264_v57, 0.0  ;;  %v3366_v17 = vmax.f32 %v495_v5, 0.0 }
  0xe8   :  { %v3361_v11 = vmax.f32 %v259_v3, 0.0  ;;  %v786_v12 = vadd.f32 %v785_v1, %v3354_v0  ;;  %v2338_v13 = vpop.f32.mrb[6].mxu0  ;;  %v566_v20 = vadd.f32 %v565_v7, %v3350_v59  ;;  %v2366_v26 = vpop.f32.mrb[6].mxu1 }
  0xe9   :  { %4066 = vst [vmem:[#allocation27_spill] sm:$0xff] %v3364_v15  ;;  %v268_v16 = vpop.f32.mrb[7].mxu0  ;;  %4067 = vst [vmem:[#allocation28_spill] sm:$0xff] %v3366_v17  ;;  %v3368_v19 = vmax.f32 %v490_v9, 0.0  ;;  %v274_v28 = vadd.f32 %v2338_v13, %v3320_v24  ;;  %v505_v30 = vadd.f32 %v2366_v26, %v3325_v25  ;;  %v499_v31 = vpop.f32.mrb[7].mxu1 }
  0xea   :  { %4065 = vst [vmem:[#allocation26_spill] sm:$0xff] %v3361_v11  ;;  %v787_v27 = vadd.f32 %v786_v12, %v3361_v11  ;;  %v269_v29 = vadd.f32 %v3320_v24, %v268_v16  ;;  %v500_v33 = vadd.f32 %v3325_v25, %v499_v31 }
  0xeb   :  { %4068 = vst [vmem:[#allocation29_spill] sm:$0xff] %v3368_v19  ;;  %v567_v32 = vadd.f32 %v566_v20, %v3368_v19  ;;  %v3381_v45 = vmax.f32 %v505_v30, 0.0  ;;  %v3386_v52 = vmax.f32 %v274_v28, 0.0 }
  0xec   :  { %v3377_v36 = vmax.f32 %v269_v29, 0.0  ;;  %v788_v38 = vadd.f32 %v787_v27, %v3364_v15  ;;  %v2341_v40 = vpop.f32.mrb[8].mxu0  ;;  %v3383_v47 = vmax.f32 %v500_v33, 0.0  ;;  %v2369_v51 = vpop.f32.mrb[8].mxu1 }
  0xed   :  { %v284_v42 = vadd.f32 %v2341_v40, %v3320_v24  ;;  %4070 = vst [vmem:[#allocation31_spill] sm:$0xff] %v3381_v45  ;;  %v278_v46 = vpop.f32.mrb[9].mxu0  ;;  %v568_v49 = vadd.f32 %v567_v32, %v3366_v17  ;;  %4072 = vst [vmem:[#allocation33_spill] sm:$0xff] %v3386_v52  ;;  %v515_v58 = vadd.f32 %v2369_v51, %v3325_v25  ;;  %v509_v63 = vpop.f32.mrb[9].mxu1 }
  0xee   :  { %4069 = vst [vmem:[#allocation30_spill] sm:$0xff] %v3377_v36  ;;  %4071 = vst [vmem:[#allocation32_spill] sm:$0xff] %v3383_v47  ;;  %v789_v55 = vadd.f32 %v788_v38, %v3377_v36  ;;  %v279_v57 = vadd.f32 %v3320_v24, %v278_v46  ;;  %v510_v3 = vadd.f32 %v3325_v25, %v509_v63 }
  0xef   :  { %v569_v1 = vadd.f32 %v568_v49, %v3383_v47  ;;  %v3394_v6 = vmax.f32 %v284_v42, 0.0  ;;  %v3398_v9 = vmax.f32 %v515_v58, 0.0 }
  0xf0   :  { %v790_v5 = vadd.f32 %v789_v55, %v3386_v52  ;;  %v3396_v7 = vmax.f32 %v279_v57, 0.0  ;;  %v2344_v12 = vpop.f32.mrb[10].mxu0  ;;  %v3401_v16 = vmax.f32 %v510_v3, 0.0  ;;  %v2372_v20 = vpop.f32.mrb[10].mxu1 }
  0xf1   :  { %4073 = vst [vmem:[#allocation34_spill] sm:$0xff] %v3394_v6  ;;  %4075 = vst [vmem:[#allocation36_spill] sm:$0xff] %v3398_v9  ;;  %v570_v13 = vadd.f32 %v569_v1, %v3381_v45  ;;  %v288_v26 = vpop.f32.mrb[11].mxu0  ;;  %v294_v27 = vadd.f32 %v2344_v12, %v3320_v24  ;;  %v525_v28 = vadd.f32 %v2372_v20, %v3325_v25  ;;  %v519_v30 = vpop.f32.mrb[11].mxu1 }
  0xf2   :  { %4074 = vst [vmem:[#allocation35_spill] sm:$0xff] %v3396_v7  ;;  %4076 = vst [vmem:[#allocation37_spill] sm:$0xff] %v3401_v16  ;;  %v289_v29 = vadd.f32 %v3320_v24, %v288_v26  ;;  %v577_v31 = vadd.f32 %v3398_v9, %v3401_v16  ;;  %v520_v32 = vadd.f32 %v3325_v25, %v519_v30  ;;  %v791_v33 = vrot.slane %v790_v5, 4 }
  0xf3   :  { %v797_v38 = vadd.f32 %v3394_v6, %v3396_v7  ;;  %v571_v40 = vrot.slane %v570_v13, 4  ;;  %v3413_v49 = vmax.f32 %v525_v28, 0.0  ;;  %v3418_v63 = vmax.f32 %v294_v27, 0.0 }
  0xf4   :  { %v3411_v42 = vmax.f32 %v289_v29, 0.0  ;;  %v2347_v46 = vpop.f32.mrb[12].mxu0  ;;  %v3415_v51 = vmax.f32 %v520_v32, 0.0  ;;  %v2375_v57 = vpop.f32.mrb[12].mxu1  ;;  %v792_v29 = vadd.f32 %v791_v33, %v790_v5 }
  0xf5   :  { %4078 = vst [vmem:[#allocation39_spill] sm:$0xff] %v3413_v49  ;;  %v304_v55 = vadd.f32 %v2347_v46, %v3320_v24  ;;  %v298_v58 = vpop.f32.mrb[13].mxu0  ;;  %4080 = vst [vmem:[#allocation41_spill] sm:$0xff] %v3418_v63  ;;  %v535_v3 = vadd.f32 %v2375_v57, %v3325_v25  ;;  %v529_v20 = vpop.f32.mrb[13].mxu1  ;;  %v572_v30 = vadd.f32 %v571_v40, %v570_v13 }
  0xf6   :  { %4077 = vst [vmem:[#allocation38_spill] sm:$0xff] %v3411_v42  ;;  %4079 = vst [vmem:[#allocation40_spill] sm:$0xff] %v3415_v51  ;;  %v798_v1 = vadd.f32 %v797_v38, %v3411_v42  ;;  %v299_v12 = vadd.f32 %v3320_v24, %v298_v58  ;;  %v578_v26 = vadd.f32 %v577_v31, %v3415_v51 }
  0xf7   :  { %v530_v28 = vadd.f32 %v3325_v25, %v529_v20  ;;  %v3428_v27 = vmax.f32 %v304_v55, 0.0  ;;  %v3430_v43 = vmax.f32 %v535_v3, 0.0  ;;  %v573_v20 = vrot.slane %v572_v30, 2 }
  0xf8   :  { %v3425_v32 = vmax.f32 %v299_v12, 0.0  ;;  %v799_v46 = vadd.f32 %v798_v1, %v3418_v63  ;;  %v2350_v21 = vpop.f32.mrb[14].mxu0  ;;  %v579_v57 = vadd.f32 %v578_v26, %v3413_v49  ;;  %v2378_v58 = vpop.f32.mrb[14].mxu1 }
  0xf9   :  { %4082 = vst [vmem:[#allocation43_spill] sm:$0xff] %v3428_v27  ;;  %4083 = vst [vmem:[#allocation44_spill] sm:$0xff] %v3430_v43  ;;  %v3432_v38 = vmax.f32 %v530_v28, 0.0  ;;  %v308_v22 = vpop.f32.mrb[15].mxu0  ;;  %v314_v5 = vadd.f32 %v2350_v21, %v3320_v24  ;;  %v545_v13 = vadd.f32 %v2378_v58, %v3325_v25  ;;  %v539_v40 = vpop.f32.mrb[15].mxu1 }
  0xfa   :  { %4081 = vst [vmem:[#allocation42_spill] sm:$0xff] %v3425_v32  ;;  %v800_v31 = vadd.f32 %v799_v46, %v3425_v32  ;;  %v309_v33 = vadd.f32 %v3320_v24, %v308_v22  ;;  %v540_v1 = vadd.f32 %v3325_v25, %v539_v40  ;;  %v793_v46 = vrot.slane %v792_v29, 2 }
  0xfb   :  { %4084 = vst [vmem:[#allocation45_spill] sm:$0xff] %v3432_v38  ;;  %v580_v55 = vadd.f32 %v579_v57, %v3432_v38  ;;  %v3444_v26 = vmax.f32 %v545_v13, 0.0  ;;  %v3449_v58 = vmax.f32 %v314_v5, 0.0  ;;  %v574_v57 = vadd.f32 %v573_v20, %v572_v30  ;;  %v96_v30 = vld [vmem:[%s3975_s12] sm:$0xff] }
  0xfc   :  { %v3441_v3 = vmax.f32 %v309_v33, 0.0  ;;  %v801_v12 = vadd.f32 %v800_v31, %v3428_v27  ;;  %v3446_v28 = vmax.f32 %v540_v1, 0.0  ;;  %v794_v31 = vadd.f32 %v793_v46, %v792_v29  ;;  %v97_v29 = vld [vmem:[%s3975_s12 + $0x8] sm:$0xff]  ;;  %v74_v46 = vld [vmem:[%s3971_s8] sm:$0xff] }
  0xfd   :  { %4086 = vst [vmem:[#allocation47_spill] sm:$0xff] %v3444_v26  ;;  %v581_v21 = vadd.f32 %v580_v55, %v3430_v43  ;;  %4088 = vst [vmem:[#allocation49_spill] sm:$0xff] %v3449_v58  ;;  %v575_v8 = vrot.slane %v574_v57, 1 }
  0xfe   :  { %4085 = vst [vmem:[#allocation46_spill] sm:$0xff] %v3441_v3  ;;  %4087 = vst [vmem:[#allocation48_spill] sm:$0xff] %v3446_v28  ;;  %v802_v22 = vadd.f32 %v801_v12, %v3441_v3  ;;  %v795_v55 = vrot.slane %v794_v31, 1 }
  0xff   :  { %v582_v24 = vadd.f32 %v581_v21, %v3446_v28  ;;  %v576_v48 = vadd.f32 %v575_v8, %v574_v57 }
 0x100   :  { %v803_v25 = vadd.f32 %v802_v22, %v3449_v58  ;;  %v796_v12 = vadd.f32 %v795_v55, %v794_v31  ;;  %v76_v31 = vld [vmem:[%s3971_s8 + $0x10] sm:$0xff]  ;;  %v99_v55 = vld [vmem:[%s3975_s12 + $0x18] sm:$0xff] }
 0x101   :  { %v583_v33 = vadd.f32 %v582_v24, %v3444_v26  ;;  %v591_v8 = vmul.f32 0.015625, %v576_v48  ;;  %v3467_v24 = vpack.c.bf16 %v97_v29, %v96_v30  ;;  %v4090_v48 = vmov 0.0  }
 0x102   :  { %v804_v40 = vrot.slane %v803_v25, 4 }
 0x103   :  { %v584_v13 = vrot.slane %v583_v33, 4 }
 0x104   :  { %v805_v14 = vadd.f32 %v804_v40, %v803_v25  ;;  %v77_v40 = vld [vmem:[%s3971_s8 + $0x18] sm:$0xff] }
 0x105   :  { %v585_v1 = vadd.f32 %v584_v13, %v583_v33  ;;  %v98_v13 = vld [vmem:[%s3975_s12 + $0x10] sm:$0xff] }
 0x106   :  { %v806_v2 = vrot.slane %v805_v14, 2 }
 0x107   :  { %v586_v60 = vrot.slane %v585_v1, 2 }
 0x108   :  { %v807_v5 = vadd.f32 %v806_v2, %v805_v14  ;;  %v810_v14 = vmul.f32 0.015625, %v796_v12  ;;  %v3504_v12 = vld [vmem:[%s3974_s11] ss:$0 sm:$0xff] }
 0x109   :  { %v587_v54 = vadd.f32 %v586_v60, %v585_v1  ;;  %v75_v60 = vld [vmem:[%s3971_s8 + $0x8] sm:$0xff]  ;;  %v3490_v1 = vpack.c.bf16 %v77_v40, %v76_v31 }
 0x10a   :  { %v808_v41 = vrot.slane %v807_v5, 1  ;;  %v3469_v57 = vpack.c.bf16 %v75_v60, %v74_v46 }
 0x10b   :  { %v588_v21 = vrot.slane %v587_v54, 1 }
 0x10c   :  { %v809_v20 = vadd.f32 %v808_v41, %v807_v5  ;;  %v3495_v5 = vpack.c.bf16 %v99_v55, %v98_v13 }
 0x10d   :  { %v589_v2 = vadd.f32 %v588_v21, %v587_v54  ;;  %v4089_v54 = vmov 0.0|0.0   ;;  %v3509_v21 = vld [vmem:[%s3970_s7] ss:$0 sm:$0xff] }
 0x10e   :  { %v811_v22 = vmul.f32 0.015625, %v809_v20 }
 0x10f   :  { %v592_v25 = vmul.f32 0.015625, %v589_v2 }
 0x110   :  { %v820_v41 = vsel %vm601_vm2, %v811_v22, %v810_v14  ;;  %v3542_v22 = vld [vmem:[%s3976_s13] ss:$0 sm:$0xff] }
 0x111   :  { %v602_v33 = vsel %vm601_vm2, %v592_v25, %v591_v8  ;;  %2458 = vmatmul.mubr.f32.vlgmr.msra.gmra.mrb[16].mxu0 %v820_v41 }
 0x112   :  { %2412 = vmatmul.mubr.f32.vlgmr.msra.gmra.mrb[16].mxu1 %v602_v33  ;;  %2719 = vmatpush3.bf16.msra.mxu0 %v3467_v24 }
 0x113   :  { %2689 = vmatpush3.bf16.msra.mxu1 %v3469_v57  ;;  %2720 = vmatprep.subr.bf16.mxu0 %v4089_v54 }
 0x114   :  { %2690 = vmatprep.subr.bf16.mxu1 %v4089_v54  ;;  %2422 = vmatprep.mubr.msk.f32.mxu1 %vm2924_vm1, %v4090_v48 }
 0x115   :  { %2468 = vmatprep.mubr.msk.f32.mxu0 %vm2924_vm1, %v4090_v48 }
 0x116   :  { %2722 = vmatpush3.bf16.msra.mxu0 %v3495_v5 }
 0x117   :  { %2692 = vmatpush3.bf16.msra.mxu1 %v3490_v1  ;;  %2747 = vmatprep.subr.bf16.mxu0 %v4089_v54 }
 0x118   :  { %2723 = vmatprep.subr.bf16.mxu1 %v4089_v54 }
 0x1e4   :  { %v888_v30 = vpop.f32.mrb[16].mxu0 }
 0x1e5   :  { %v670_v29 = vpop.f32.mrb[16].mxu1  ;;  %v889_v20 = vadd.f32 %v3504_v12, %v888_v30  ;;  %v2459_v46 = vpop.f32.mrb[17].mxu0 }
 0x1e6   :  { %v671_v60 = vadd.f32 %v3509_v21, %v670_v29  ;;  %v2413_v2 = vpop.f32.mrb[17].mxu1  ;;  %v2926_v29 = vmov 1966171168   ;;  %v765_v46 = vlaneseq }
 0x1e7   :  { %v892_v8 = vmax.f32 %v889_v20, 0.0  ;;  %v763_v20 = vunpack.c.l.s4 %v2926_v29 }
 0x1e8   :  { %v674_v14 = vmax.f32 %v671_v60, 0.0  ;;  %v766_v2 = vshrl.u32 %v765_v46, 7 }
 0x1e9   :  { %2469 = vmatmul.mubr.msk.f32.vlgmr.msra.gmra.mrb[18].mxu0 %vm681_vm3, %v892_v8  ;;  %v764_v60 = vunpack.c.0.s8 %v763_v20 }
 0x1ea   :  { %2423 = vmatmul.mubr.msk.f32.vlgmr.msra.gmra.mrb[18].mxu1 %vm681_vm3, %v674_v14  ;;  %2749 = vmatpush3.bf16.msra.mxu0 %v3469_v57 }
 0x1eb   :  { %2725 = vmatpush3.bf16.msra.mxu1 %v3167_v44  ;;  %2503 = vmatprep.mubr.msk.f32.mxu1 %vm2924_vm1, %v4090_v48  ;;  %v3547_v8 = vsub.s32 %v764_v60, %v766_v2 }
 0x1ec   :  { %2726 = vmatprep.subr.bf16.mxu1 %v4089_v54  ;;  %2750 = vmatprep.subr.bf16.mxu0 %v4089_v54 }
 0x1ed   :  { %2514 = vmatprep.mubr.msk.f32.mxu0 %vm2924_vm1, %v4090_v48 }
 0x1ee   :  { %2752 = vmatpush3.bf16.msra.mxu0 %v3490_v1 }
 0x1ef   :  { %2728 = vmatpush3.bf16.msra.mxu1 %v3187_v50  ;;  %2753 = vmatprep.subr.bf16.mxu0 %v4089_v54 }
 0x1f0   :  { %2729 = vmatprep.subr.bf16.mxu1 %v4089_v54 }
 0x1f3   :  { %2731 = vmatpush3.bf16.msra.mxu1 %v3207_v56 }
 0x1f4   :  { %2732 = vmatprep.subr.bf16.mxu1 %v4089_v54 }
 0x1f7   :  { %2734 = vmatpush3.bf16.msra.mxu1 %v3227_v62 }
 0x1f8   :  { %2735 = vmatprep.subr.bf16.mxu1 %v4089_v54 }
 0x1fb   :  { %2737 = vmatpush3.bf16.msra.mxu1 %v3247_v4 }
 0x1fc   :  { %2738 = vmatprep.subr.bf16.mxu1 %v4089_v54 }
 0x1ff   :  { %2740 = vmatpush3.bf16.msra.mxu1 %v3267_v10 }
 0x200   :  { %2741 = vmatprep.subr.bf16.mxu1 %v4089_v54 }
 0x203   :  { %2743 = vmatpush3.bf16.msra.mxu1 %v3293_v18 }
 0x204   :  { %2744 = vmatprep.subr.bf16.mxu1 %v4089_v54 }
 0x207   :  { %2746 = vmatpush3.bf16.msra.mxu1 %v3310_v23  ;;  %v3549_v23 = vsub.s32 0, %v766_v2 }
 0x208   :  { %2777 = vmatprep.subr.bf16.mxu1 %v4089_v54 }
 0x2bc   :  { %v968_v25 = vpop.f32.mrb[18].mxu0 }
 0x2bd   :  { %v3544_v41 = vpop.f32.mrb[18].mxu1  ;;  %v969_v33 = vadd.f32 %v3542_v22, %v968_v25  ;;  %v2470_v31 = vpop.f32.mrb[19].mxu0 }
 0x2be   :  { %v2424_v40 = vpop.f32.mrb[19].mxu1 }
 0x2bf   :  { %v2146_v13 = vmul.f32 -1.442695, %v969_v33 }
 0x2c1   :  { %2851 = vpow2.f32 %v2146_v13 }
 0x2cb   :  { %v2852_v55 = vpop.eup %2851 }
 0x2cc   :  { %v975_v30 = vadd.f32 1.0, %v2852_v55 }
 0x2ce   :  { %2853 = vrcp.f32 %v975_v30 }
 0x2d8   :  { %v2854_v14 = vpop.eup %2853 }
 0x2d9   :  { %v985_v18 = vrot.slane %v2854_v14, %v3547_v8 }
 0x2db   :  { %v986_v25 = vcombine.high %v985_v18, %v985_v18  ;;  %v993_v31 = vrot.slane %v985_v18, %v3547_v8 }
 0x2dd   :  { %v1000_v33 = vrot.slane %v986_v25, %v3547_v8  ;;  %v1030_v40 = vrot.slane %v993_v31, %v3549_v23 }
 0x2df   :  { %v1034_v13 = vrot.slane %v1000_v33, %v3549_v23  ;;  %v3557_v55 = vmul.f32 %v1030_v40, %v3337_v39  ;;  %v3560_v30 = vmul.f32 %v1030_v40, %v3335_v37  ;;  %v3569_v18 = vmul.f32 %v1030_v40, %v3352_v61 }
 0x2e0   :  { %v3579_v14 = vmul.f32 %v1030_v40, %v3350_v59  ;;  %v3595_v59 = vmul.f32 %v1030_v40, %v3366_v17  ;;  %v3611_v17 = vmul.f32 %v1030_v40, %v3381_v45 }
 0x2e1   :  { %v3563_v29 = vmul.f32 %v1034_v13, %v3401_v16  ;;  %v3566_v20 = vmul.f32 %v1034_v13, %v3398_v9  ;;  %v3572_v46 = vmul.f32 %v1034_v13, %v3415_v51  ;;  %v1053_v60 = vadd.f32 %v3560_v30, %v3557_v55 }
 0x2e2   :  { %v3582_v25 = vmul.f32 %v1034_v13, %v3413_v49  ;;  %v3587_v9 = vmul.f32 %v1030_v40, %v3368_v19  ;;  %v3590_v51 = vmul.f32 %v1034_v13, %v3432_v38  ;;  %4094 = vst [vmem:[#allocation53_spill] sm:$0xff] %v3595_v59  ;;  %v3598_v49 = vmul.f32 %v1034_v13, %v3430_v43 }
 0x2e3   :  { %v1066_v2 = vadd.f32 %v3566_v20, %v3563_v29  ;;  %v1054_v31 = vadd.f32 %v1053_v60, %v3569_v18  ;;  %v3603_v19 = vmul.f32 %v1030_v40, %v3383_v47  ;;  %v3606_v38 = vmul.f32 %v1034_v13, %v3446_v28 }
 0x2e4   :  { %4091 = vst [vmem:[#allocation50_spill] sm:$0xff] %v3582_v25  ;;  %4092 = vst [vmem:[#allocation51_spill] sm:$0xff] %v3587_v9  ;;  %v3614_v43 = vmul.f32 %v1034_v13, %v3444_v26 }
 0x2e5   :  { %v1067_v33 = vadd.f32 %v1066_v2, %v3572_v46  ;;  %4093 = vst [vmem:[#allocation52_spill] sm:$0xff] %v3590_v51  ;;  %v1055_v16 = vadd.f32 %v1054_v31, %v3579_v14  ;;  %4095 = vst [vmem:[#allocation54_spill] sm:$0xff] %v3598_v49 }
 0x2e7   :  { %v1068_v61 = vadd.f32 %v1067_v33, %v3582_v25  ;;  %v1056_v60 = vadd.f32 %v1055_v16, %v3587_v9 }
 0x2e9   :  { %v1069_v2 = vadd.f32 %v1068_v61, %v3590_v51  ;;  %v1057_v31 = vadd.f32 %v1056_v60, %v3595_v59 }
 0x2eb   :  { %v1070_v33 = vadd.f32 %v1069_v2, %v3598_v49  ;;  %v1058_v16 = vadd.f32 %v1057_v31, %v3603_v19 }
 0x2ed   :  { %v1071_v61 = vadd.f32 %v1070_v33, %v3606_v38  ;;  %v1059_v47 = vadd.f32 %v1058_v16, %v3611_v17 }
 0x2ef   :  { %v1072_v37 = vadd.f32 %v1071_v61, %v3614_v43  ;;  %v1060_v28 = vrot.slane %v1059_v47, 4 }
 0x2f1   :  { %v1073_v39 = vrot.slane %v1072_v37, 4  ;;  %v1061_v51 = vadd.f32 %v1060_v28, %v1059_v47 }
 0x2f3   :  { %v1074_v60 = vadd.f32 %v1073_v39, %v1072_v37  ;;  %v1062_v59 = vrot.slane %v1061_v51, 2  ;;  %v3630_v37 = vld [vmem:[%s3972_s9] ss:$0 sm:$0xff]  ;;  %s2927_s9 = smov [#allocation2]  }
 0x2f4   :  { %v752_v39 = vadd.f32 %v3630_v37, %v3544_v41  ;;  %s2078_s6 = sshll.u32 %s2927_s9, 4  ;;  %s2079_s6 = int_to_ptr.vmem [resolvable:$true] %s2078_s6 }
 0x2f5   :  { %v1075_v2 = vrot.slane %v1074_v60, 2  ;;  %v1063_v49 = vadd.f32 %v1062_v59, %v1061_v51  ;;  %s2875_s10 = scalar_lea.vmem %s2079_s6, 2048  ;;  %p2880_p1 = scmp.lt.s32.totalorder %s2079_s6, %s2079_s6 }
 0x2f6   :  { %v2142_v59 = vmul.f32 -1.442695, %v752_v39  ;;  %p2876_p0 = scmp.ne.s32.totalorder %s2079_s6, %s2875_s10  ;;  %p2881_p2 = scmp.lt.s32.totalorder %s2875_s10, %s2875_s10 }
 0x2f7   :  { %v1076_v40 = vadd.f32 %v1075_v2, %v1074_v60  ;;  %v1064_v45 = vrot.slane %v1063_v49, 1 }
 0x2f8   :  { %2855 = vpow2.f32 %v2142_v59  ;;  %p2882_p3 = por %p2881_p2, %p2880_p1 }
 0x2f9   :  { %v1077_v9 = vrot.slane %v1076_v40, 1  ;;  %v1065_v13 = vadd.f32 %v1064_v45, %v1063_v49 }
 0x2fa   :  { %p2883_p4 = pnand %p2882_p3, %p2876_p0 }
 0x2fb   :  { %v1078_v26 = vadd.f32 %v1077_v9, %v1076_v40  ;;  %v1079_v25 = vmul.f32 0.015625, %v1065_v13 }
 0x2fd   :  { %v1080_v31 = vmul.f32 0.015625, %v1078_v26 }
 0x2ff   :  { %v1083_v33 = vsel %vm601_vm2, %v1080_v31, %v1079_v25 }
 0x300   :  { %2504 = vmatmul.mubr.f32.vlgmr.msra.gmra.mrb[20].mxu1 %v1083_v33 }
 0x301   :  { %2779 = vmatpush3.bf16.msra.mxu1 %v3467_v24  ;;  %2560 = vmatprep.mubr.msk.f32.mxu1 %vm2924_vm1, %v4090_v48 }
 0x302   :  { %2780 = vmatprep.subr.bf16.mxu1 %v4089_v54  ;;  %v2856_v45 = vpop.eup %2855 }
 0x303   :  { %v758_v47 = vadd.f32 1.0, %v2856_v45 }
 0x305   :  { %2782 = vmatpush3.bf16.msra.mxu1 %v3495_v5  ;;  %2857 = vrcp.f32 %v758_v47 }
 0x306   :  { %2783 = vmatprep.subr.bf16.mxu1 %v4089_v54 }
 0x30f   :  { %v2858_v9 = vpop.eup %2857 }
 0x310   :  { %v768_v49 = vrot.slane %v2858_v9, %v3547_v8 }
 0x312   :  { %v769_v51 = vcombine.high %v768_v49, %v768_v49  ;;  %v776_v28 = vrot.slane %v768_v49, %v3547_v8 }
 0x314   :  { %v783_v26 = vrot.slane %v769_v51, %v3547_v8  ;;  %v1004_v16 = vrot.slane %v776_v28, %v3549_v23 }
 0x316   :  { %v1008_v25 = vrot.slane %v783_v26, %v3549_v23  ;;  %v3646_v60 = vmul.f32 %v1004_v16, %v3333_v35  ;;  %v3649_v2 = vmul.f32 %v1004_v16, %v3331_v34  ;;  %v3659_v33 = vmul.f32 %v1004_v16, %v3347_v53  ;;  %v4101_v53 = vld [vmem:[#allocation13_spill] sm:$0xff]  ;;  %v4103_v35 = vld [vmem:[#allocation16_spill] sm:$0xff] }
 0x317   :  { %v3667_v47 = vmul.f32 %v1004_v16, %v3354_v0  ;;  %v3675_v26 = vmul.f32 %v1004_v16, %v3361_v11 }
 0x318   :  { %v3640_v61 = vmul.f32 %v1008_v25, %v3396_v7  ;;  %v3643_v41 = vmul.f32 %v1008_v25, %v3394_v6  ;;  %v3654_v13 = vmul.f32 %v1008_v25, %v3411_v42  ;;  %v1258_v31 = vadd.f32 %v3649_v2, %v3646_v60 }
 0x319   :  { %v3663_v59 = vmul.f32 %v1008_v25, %v3418_v63  ;;  %v3671_v49 = vmul.f32 %v1008_v25, %v3425_v32  ;;  %v3683_v63 = vmul.f32 %v1004_v16, %v3364_v15  ;;  %v3687_v32 = vmul.f32 %v1008_v25, %v3441_v3 }
 0x31a   :  { %v1271_v40 = vadd.f32 %v3643_v41, %v3640_v61  ;;  %v1259_v45 = vadd.f32 %v1258_v31, %v3659_v33  ;;  %v3691_v6 = vmul.f32 %v1004_v16, %v3377_v36  ;;  %v3700_v3 = vmul.f32 %v1004_v16, %v3386_v52  ;;  %v4096_v36 = vld [vmem:[#allocation8_spill] sm:$0xff] }
 0x31b   :  { %v4100_v52 = vld [vmem:[#allocation12_spill] sm:$0xff] }
 0x31c   :  { %v1272_v39 = vadd.f32 %v1271_v40, %v3654_v13  ;;  %v1260_v51 = vadd.f32 %v1259_v45, %v3667_v47  ;;  %v3679_v40 = vmul.f32 %v1008_v25, %v3428_v27 }
 0x31e   :  { %v1273_v9 = vadd.f32 %v1272_v39, %v3663_v59  ;;  %v1261_v31 = vadd.f32 %v1260_v51, %v3675_v26  ;;  %v3696_v51 = vmul.f32 %v1008_v25, %v3449_v58  ;;  %v4097_v25 = vld [vmem:[#allocation9_spill] sm:$0xff] }
 0x320   :  { %v1274_v28 = vadd.f32 %v1273_v9, %v3671_v49  ;;  %v1262_v45 = vadd.f32 %v1261_v31, %v3683_v63 }
 0x322   :  { %v1275_v39 = vadd.f32 %v1274_v28, %v3679_v40  ;;  %v1263_v15 = vadd.f32 %v1262_v45, %v3691_v6 }
 0x324   :  { %v1276_v9 = vadd.f32 %v1275_v39, %v3687_v32  ;;  %v4098_v39 = vld [vmem:[#allocation10_spill] sm:$0xff] }
 0x326   :  { %v1277_v31 = vadd.f32 %v1276_v9, %v3696_v51 }
 0x3d3   :  { %v1151_v42 = vpop.f32.mrb[20].mxu1 }
 0x3d4   :  { %v1152_v27 = vadd.f32 %v3509_v21, %v1151_v42  ;;  %v2505_v7 = vpop.f32.mrb[21].mxu1  ;;  %v1278_v42 = vrot.slane %v1277_v31, 4 }
 0x3d5   :  { %v1264_v7 = vadd.f32 %v1263_v15, %v3700_v3 }
 0x3d6   :  { %v1155_v28 = vmax.f32 %v1152_v27, 0.0  ;;  %v1279_v16 = vadd.f32 %v1278_v42, %v1277_v31  ;;  %v4102_v42 = vld [vmem:[#allocation14_spill] sm:$0xff] }
 0x3d7   :  { %v1265_v27 = vrot.slane %v1264_v7, 4 }
 0x3d8   :  { %2515 = vmatmul.mubr.msk.f32.vlgmr.msra.gmra.mrb[20].mxu0 %vm681_vm3, %v1155_v28  ;;  %v1280_v9 = vrot.slane %v1279_v16, 2  ;;  %v4099_v28 = vld [vmem:[#allocation11_spill] sm:$0xff] }
 0x3d9   :  { %2755 = vmatpush3.bf16.msra.mxu0 %v4096_v36  ;;  %2549 = vmatprep.mubr.msk.f32.mxu0 %vm2924_vm1, %v4090_v48  ;;  %v1266_v45 = vadd.f32 %v1265_v27, %v1264_v7 }
 0x3da   :  { %2756 = vmatprep.subr.bf16.mxu0 %v4089_v54  ;;  %v1281_v15 = vadd.f32 %v1280_v9, %v1279_v16 }
 0x3db   :  { %v1267_v58 = vrot.slane %v1266_v45, 2 }
 0x3dc   :  { %v1282_v0 = vrot.slane %v1281_v15, 1 }
 0x3dd   :  { %2758 = vmatpush3.bf16.msra.mxu0 %v4097_v25  ;;  %v1268_v11 = vadd.f32 %v1267_v58, %v1266_v45 }
 0x3de   :  { %2759 = vmatprep.subr.bf16.mxu0 %v4089_v54  ;;  %v1283_v7 = vadd.f32 %v1282_v0, %v1281_v15 }
 0x3df   :  { %v1269_v31 = vrot.slane %v1268_v11, 1 }
 0x3e0   :  { %v1285_v34 = vmul.f32 0.015625, %v1283_v7 }
 0x3e1   :  { %2761 = vmatpush3.bf16.msra.mxu0 %v4098_v39  ;;  %v1270_v27 = vadd.f32 %v1269_v31, %v1268_v11 }
 0x3e2   :  { %2762 = vmatprep.subr.bf16.mxu0 %v4089_v54 }
 0x3e3   :  { %v1284_v16 = vmul.f32 0.015625, %v1270_v27 }
 0x3e5   :  { %2764 = vmatpush3.bf16.msra.mxu0 %v4099_v28  ;;  %v1288_v58 = vsel %vm601_vm2, %v1285_v34, %v1284_v16 }
 0x3e6   :  { %2765 = vmatprep.subr.bf16.mxu0 %v4089_v54 }
 0x3e9   :  { %2767 = vmatpush3.bf16.msra.mxu0 %v4100_v52 }
 0x3ea   :  { %2768 = vmatprep.subr.bf16.mxu0 %v4089_v54 }
 0x3ed   :  { %2770 = vmatpush3.bf16.msra.mxu0 %v4101_v53 }
 0x3ee   :  { %2771 = vmatprep.subr.bf16.mxu0 %v4089_v54 }
 0x3f1   :  { %2773 = vmatpush3.bf16.msra.mxu0 %v4102_v42 }
 0x3f2   :  { %2774 = vmatprep.subr.bf16.mxu0 %v4089_v54 }
 0x3f5   :  { %2776 = vmatpush3.bf16.msra.mxu0 %v4103_v35 }
 0x3f6   :  { %2807 = vmatprep.subr.bf16.mxu0 %v4089_v54 }
 0x3f8   :  { %2550 = vmatmul.mubr.f32.vlgmr.msra.gmra.mrb[22].mxu0 %v1288_v58 }
 0x3f9   :  { %2809 = vmatpush3.bf16.msra.mxu0 %v3469_v57  ;;  %2606 = vmatprep.mubr.msk.f32.mxu0 %vm2924_vm1, %v4090_v48 }
 0x3fa   :  { %2810 = vmatprep.subr.bf16.mxu0 %v4089_v54 }
 0x3fd   :  { %2812 = vmatpush3.bf16.msra.mxu0 %v3490_v1 }
 0x3fe   :  { %2813 = vmatprep.subr.bf16.mxu0 %v4089_v54 }
 0x4ab   :  { %v3730_v0 = vpop.f32.mrb[20].mxu0 }
 0x4ac   :  { %v2516_v11 = vpop.f32.mrb[21].mxu0 }
 0x4cb   :  { %v1356_v45 = vpop.f32.mrb[22].mxu0 }
 0x4cc   :  { %v1357_v9 = vadd.f32 %v3504_v12, %v1356_v45  ;;  %v2551_v15 = vpop.f32.mrb[23].mxu0 }
 0x4ce   :  { %v1360_v34 = vmax.f32 %v1357_v9, 0.0 }
 0x4d0   :  { %2561 = vmatmul.mubr.msk.f32.vlgmr.msra.gmra.mrb[22].mxu1 %vm681_vm3, %v1360_v34 }
 0x4d1   :  { %2785 = vmatpush3.bf16.msra.mxu1 %v3167_v44  ;;  %2595 = vmatprep.mubr.msk.f32.mxu1 %vm2924_vm1, %v4090_v48  ;;  %v4104_v44 = vld [vmem:[#allocation15_spill] sm:$0xff] }
 0x4d2   :  { %2786 = vmatprep.subr.bf16.mxu1 %v4089_v54 }
 0x4d5   :  { %2788 = vmatpush3.bf16.msra.mxu1 %v3187_v50  ;;  %v4105_v50 = vld [vmem:[#allocation17_spill] sm:$0xff] }
 0x4d6   :  { %2789 = vmatprep.subr.bf16.mxu1 %v4089_v54 }
 0x4d9   :  { %2791 = vmatpush3.bf16.msra.mxu1 %v3207_v56 }
 0x4da   :  { %2792 = vmatprep.subr.bf16.mxu1 %v4089_v54 }
 0x4dd   :  { %2794 = vmatpush3.bf16.msra.mxu1 %v3227_v62 }
 0x4de   :  { %2795 = vmatprep.subr.bf16.mxu1 %v4089_v54 }
 0x4e1   :  { %2797 = vmatpush3.bf16.msra.mxu1 %v3247_v4 }
 0x4e2   :  { %2798 = vmatprep.subr.bf16.mxu1 %v4089_v54 }
 0x4e5   :  { %2800 = vmatpush3.bf16.msra.mxu1 %v3267_v10 }
 0x4e6   :  { %2801 = vmatprep.subr.bf16.mxu1 %v4089_v54 }
 0x4e9   :  { %2803 = vmatpush3.bf16.msra.mxu1 %v4104_v44 }
 0x4ea   :  { %2804 = vmatprep.subr.bf16.mxu1 %v4089_v54 }
 0x4ed   :  { %2806 = vmatpush3.bf16.msra.mxu1 %v4105_v50 }
 0x4ee   :  { %2837 = vmatprep.subr.bf16.mxu1 %v4089_v54 }
 0x5a3   :  { %v1430_v56 = vpop.f32.mrb[22].mxu1 }
 0x5a4   :  { %v1431_v62 = vadd.f32 %v3542_v22, %v1430_v56  ;;  %v2562_v57 = vpop.f32.mrb[23].mxu1 }
 0x5a6   :  { %v2150_v1 = vmul.f32 -1.442695, %v1431_v62 }
 0x5a8   :  { %2859 = vpow2.f32 %v2150_v1  ;;  %v4111_v1 = vld [vmem:[#allocation51_spill] sm:$0xff] }
 0x5b2   :  { %v2860_v4 = vpop.eup %2859 }
 0x5b3   :  { %v1437_v31 = vadd.f32 1.0, %v2860_v4 }
 0x5b5   :  { %2861 = vrcp.f32 %v1437_v31 }
 0x5bf   :  { %v2862_v10 = vpop.eup %2861 }
 0x5c0   :  { %v1447_v7 = vrot.slane %v2862_v10, %v3547_v8 }
 0x5c2   :  { %v1448_v27 = vcombine.high %v1447_v7, %v1447_v7  ;;  %v1455_v16 = vrot.slane %v1447_v7, %v3547_v8 }
 0x5c4   :  { %v1462_v58 = vrot.slane %v1448_v27, %v3547_v8  ;;  %v1492_v11 = vrot.slane %v1455_v16, %v3549_v23  ;;  %v4114_v27 = vld [vmem:[#allocation53_spill] sm:$0xff]  ;;  %v4115_v16 = vld [vmem:[#allocation54_spill] sm:$0xff] }
 0x5c6   :  { %v1496_v45 = vrot.slane %v1462_v58, %v3549_v23  ;;  %v3759_v9 = vmul.f32 %v1492_v11, %v3557_v55  ;;  %v3762_v15 = vmul.f32 %v1492_v11, %v3560_v30  ;;  %v3771_v50 = vmul.f32 %v1492_v11, %v3569_v18 }
 0x5c7   :  { %v3781_v30 = vmul.f32 %v1492_v11, %v3579_v14  ;;  %v3789_v4 = vmul.f32 %v1492_v11, %v4111_v1  ;;  %v3797_v14 = vmul.f32 %v1492_v11, %v4114_v27 }
 0x5c8   :  { %v3765_v34 = vmul.f32 %v1496_v45, %v3563_v29  ;;  %v3768_v44 = vmul.f32 %v1496_v45, %v3566_v20  ;;  %v3774_v56 = vmul.f32 %v1496_v45, %v3572_v46  ;;  %v1515_v62 = vadd.f32 %v3762_v15, %v3759_v9  ;;  %v4109_v29 = vld [vmem:[#allocation50_spill] sm:$0xff]  ;;  %v4112_v46 = vld [vmem:[#allocation52_spill] sm:$0xff] }
 0x5c9   :  { %v3784_v57 = vmul.f32 %v1496_v45, %v4109_v29  ;;  %v3792_v31 = vmul.f32 %v1496_v45, %v4112_v46  ;;  %v3800_v58 = vmul.f32 %v1496_v45, %v4115_v16  ;;  %v3805_v29 = vmul.f32 %v1492_v11, %v3603_v19 }
 0x5ca   :  { %4106 = vst [vmem:[#allocation8_spill] sm:$0xff] %v3765_v34  ;;  %4107 = vst [vmem:[#allocation9_spill] sm:$0xff] %v3768_v44  ;;  %v1528_v55 = vadd.f32 %v3768_v44, %v3765_v34  ;;  %v1516_v20 = vadd.f32 %v1515_v62, %v3771_v50  ;;  %v3808_v1 = vmul.f32 %v1496_v45, %v3606_v38 }
 0x5cb   :  { %4108 = vst [vmem:[#allocation10_spill] sm:$0xff] %v3774_v56  ;;  %4110 = vst [vmem:[#allocation11_spill] sm:$0xff] %v3784_v57  ;;  %v3813_v46 = vmul.f32 %v1492_v11, %v3611_v17  ;;  %v3816_v27 = vmul.f32 %v1496_v45, %v3614_v43 }
 0x5cc   :  { %v1529_v18 = vadd.f32 %v1528_v55, %v3774_v56  ;;  %4113 = vst [vmem:[#allocation12_spill] sm:$0xff] %v3792_v31  ;;  %v1517_v10 = vadd.f32 %v1516_v20, %v3781_v30  ;;  %4116 = vst [vmem:[#allocation13_spill] sm:$0xff] %v3800_v58 }
 0x5cd   :  { %4117 = vst [vmem:[#allocation14_spill] sm:$0xff] %v3808_v1  ;;  %4118 = vst [vmem:[#allocation16_spill] sm:$0xff] %v3813_v46 }
 0x5ce   :  { %v1530_v7 = vadd.f32 %v1529_v18, %v3784_v57  ;;  %v1518_v62 = vadd.f32 %v1517_v10, %v3789_v4  ;;  %4119 = vst [vmem:[#allocation15_spill] sm:$0xff] %v3816_v27 }
 0x5d0   :  { %v1531_v55 = vadd.f32 %v1530_v7, %v3792_v31  ;;  %v1519_v20 = vadd.f32 %v1518_v62, %v3797_v14 }
 0x5d2   :  { %v1532_v18 = vadd.f32 %v1531_v55, %v3800_v58  ;;  %v1520_v10 = vadd.f32 %v1519_v20, %v3805_v29 }
 0x5d4   :  { %v1533_v7 = vadd.f32 %v1532_v18, %v3808_v1  ;;  %v1521_v19 = vadd.f32 %v1520_v10, %v3813_v46 }
 0x5d6   :  { %v1534_v16 = vadd.f32 %v1533_v7, %v3816_v27  ;;  %v1522_v38 = vrot.slane %v1521_v19, 4 }
 0x5d8   :  { %v1535_v31 = vrot.slane %v1534_v16, 4  ;;  %v1523_v57 = vadd.f32 %v1522_v38, %v1521_v19 }
 0x5da   :  { %v1536_v62 = vadd.f32 %v1535_v31, %v1534_v16  ;;  %v1524_v56 = vrot.slane %v1523_v57, 2 }
 0x5dc   :  { %v1537_v55 = vrot.slane %v1536_v62, 2  ;;  %v1525_v58 = vadd.f32 %v1524_v56, %v1523_v57 }
 0x5de   :  { %v1538_v17 = vadd.f32 %v1537_v55, %v1536_v62  ;;  %v1526_v11 = vrot.slane %v1525_v58, 1 }
 0x5e0   :  { %v1539_v44 = vrot.slane %v1538_v17, 1  ;;  %v1527_v43 = vadd.f32 %v1526_v11, %v1525_v58 }
 0x5e2   :  { %v1540_v45 = vadd.f32 %v1539_v44, %v1538_v17  ;;  %v1541_v34 = vmul.f32 0.015625, %v1527_v43 }
 0x5e4   :  { %v1542_v20 = vmul.f32 0.015625, %v1540_v45 }
 0x5e6   :  { %v1545_v18 = vsel %vm601_vm2, %v1542_v20, %v1541_v34 }
 0x5e7   :  { %2596 = vmatmul.mubr.f32.vlgmr.msra.gmra.mrb[24].mxu1 %v1545_v18 }
 0x5e8   :  { %2839 = vmatpush3.bf16.msra.mxu1 %v3467_v24  ;;  %2652 = vmatprep.mubr.msk.f32.mxu1 %vm2924_vm1, %v4090_v48 }
 0x5e9   :  { %2840 = vmatprep.subr.bf16.mxu1 %v4089_v54 }
 0x5ec   :  { %2842 = vmatpush3.bf16.msra.mxu1 %v3495_v5 }
 0x6ba   :  { %v1613_v56 = vpop.f32.mrb[24].mxu1 }
 0x6bb   :  { %v1614_v57 = vadd.f32 %v3509_v21, %v1613_v56  ;;  %v2597_v31 = vpop.f32.mrb[25].mxu1 }
 0x6bc   :  { %v4121_v31 = vld [vmem:[#allocation18_spill] sm:$0xff] }
 0x6bd   :  { %v1617_v58 = vmax.f32 %v1614_v57, 0.0  ;;  %v4120_v57 = vld [vmem:[#allocation19_spill] sm:$0xff] }
 0x6bf   :  { %2607 = vmatmul.mubr.msk.f32.vlgmr.msra.gmra.mrb[24].mxu0 %vm681_vm3, %v1617_v58 }
 0x6c0   :  { %2815 = vmatpush3.bf16.msra.mxu0 %v4096_v36  ;;  %2641 = vmatprep.mubr.msk.f32.mxu0 %vm2924_vm1, %v4090_v48  ;;  %v1226_v36 = vadd.f32 %v3630_v37, %v3730_v0 }
 0x6c1   :  { %2816 = vmatprep.subr.bf16.mxu0 %v4089_v54 }
 0x6c2   :  { %v2148_v24 = vmul.f32 -1.442695, %v1226_v36  ;;  %v4122_v36 = vld [vmem:[#allocation22_spill] sm:$0xff] }
 0x6c4   :  { %2818 = vmatpush3.bf16.msra.mxu0 %v4097_v25  ;;  %2863 = vpow2.f32 %v2148_v24 }
 0x6c5   :  { %2819 = vmatprep.subr.bf16.mxu0 %v4089_v54 }
 0x6c8   :  { %2821 = vmatpush3.bf16.msra.mxu0 %v4098_v39 }
 0x6c9   :  { %2822 = vmatprep.subr.bf16.mxu0 %v4089_v54 }
 0x6cc   :  { %2824 = vmatpush3.bf16.msra.mxu0 %v4099_v28 }
 0x6cd   :  { %2825 = vmatprep.subr.bf16.mxu0 %v4089_v54 }
 0x6ce   :  { %v2864_v48 = vpop.eup %2863 }
 0x6cf   :  { %v1232_v5 = vadd.f32 1.0, %v2864_v48  ;;  %v4123_v48 = vld [vmem:[#allocation25_spill] sm:$0xff] }
 0x6d0   :  { %2827 = vmatpush3.bf16.msra.mxu0 %v4100_v52 }
 0x6d1   :  { %2828 = vmatprep.subr.bf16.mxu0 %v4089_v54  ;;  %2865 = vrcp.f32 %v1232_v5  ;;  %v4124_v5 = vld [vmem:[#allocation26_spill] sm:$0xff] }
 0x6d4   :  { %2830 = vmatpush3.bf16.msra.mxu0 %v4101_v53 }
 0x6d5   :  { %2831 = vmatprep.subr.bf16.mxu0 %v4089_v54 }
 0x6d8   :  { %2833 = vmatpush3.bf16.msra.mxu0 %v4102_v42 }
 0x6d9   :  { %2834 = vmatprep.subr.bf16.mxu0 %v4089_v54 }
 0x6db   :  { %v2866_v39 = vpop.eup %2865 }
 0x6dc   :  { %2836 = vmatpush3.bf16.msra.mxu0 %v4103_v35  ;;  %v1242_v54 = vrot.slane %v2866_v39, %v3547_v8  ;;  %v4129_v39 = vld [vmem:[#allocation34_spill] sm:$0xff] }
 0x6de   :  { %v1243_v35 = vcombine.high %v1242_v54, %v1242_v54  ;;  %v1250_v0 = vrot.slane %v1242_v54, %v3547_v8  ;;  %v4130_v54 = vld [vmem:[#allocation38_spill] sm:$0xff] }
 0x6e0   :  { %v1257_v34 = vrot.slane %v1243_v35, %v3547_v8  ;;  %v1466_v44 = vrot.slane %v1250_v0, %v3549_v23  ;;  %v4131_v35 = vld [vmem:[#allocation41_spill] sm:$0xff] }
 0x6e2   :  { %v1473_v19 = vmul.f32 %v1466_v44, %v3646_v60  ;;  %v1474_v16 = vmul.f32 %v1466_v44, %v3649_v2  ;;  %v1475_v38 = vmul.f32 %v1466_v44, %v3659_v33  ;;  %v1476_v62 = vmul.f32 %v1466_v44, %v3667_v47 }
 0x6e3   :  { %v1477_v11 = vmul.f32 %v1466_v44, %v3675_v26  ;;  %v1478_v43 = vmul.f32 %v1466_v44, %v3683_v63  ;;  %v1479_v45 = vmul.f32 %v1466_v44, %v3691_v6  ;;  %v1480_v20 = vmul.f32 %v1466_v44, %v3700_v3 }
 0x792   :  { %v1687_v52 = vpop.f32.mrb[24].mxu0 }
 0x793   :  { %v1688_v21 = vadd.f32 %v3630_v37, %v1687_v52  ;;  %v2608_v25 = vpop.f32.mrb[25].mxu0  ;;  %v1470_v37 = vrot.slane %v1257_v34, %v3549_v23  ;;  %v4125_v52 = vld [vmem:[#allocation27_spill] sm:$0xff]  ;;  %v4132_v34 = vld [vmem:[#allocation42_spill] sm:$0xff] }
 0x794   :  { %v4127_v25 = vld [vmem:[#allocation33_spill] sm:$0xff] }
 0x795   :  { %v2152_v53 = vmul.f32 -1.442695, %v1688_v21  ;;  %v1481_v18 = vmul.f32 %v1470_v37, %v3640_v61  ;;  %v1482_v60 = vmul.f32 %v1470_v37, %v3643_v41  ;;  %v1483_v47 = vmul.f32 %v1470_v37, %v3654_v13  ;;  %v4126_v21 = vld [vmem:[#allocation30_spill] sm:$0xff] }
 0x796   :  { %v1484_v56 = vmul.f32 %v1470_v37, %v3663_v59  ;;  %v1485_v26 = vmul.f32 %v1470_v37, %v3671_v49  ;;  %v1486_v63 = vmul.f32 %v1470_v37, %v3679_v40  ;;  %v1487_v6 = vmul.f32 %v1470_v37, %v3687_v32 }
 0x797   :  { %2867 = vpow2.f32 %v2152_v53  ;;  %v1488_v3 = vmul.f32 %v1470_v37, %v3696_v51  ;;  %v4128_v53 = vld [vmem:[#allocation35_spill] sm:$0xff] }
 0x7a1   :  { %v2868_v28 = vpop.eup %2867 }
 0x7a2   :  { %v1694_v42 = vadd.f32 1.0, %v2868_v28 }
 0x7a4   :  { %2869 = vrcp.f32 %v1694_v42 }
 0x7ae   :  { %v2870_v10 = vpop.eup %2869 }
 0x7af   :  { %v1704_v7 = vrot.slane %v2870_v10, %v3547_v8  ;;  %v4133_v10 = vld [vmem:[#allocation43_spill] sm:$0xff] }
 0x7b1   :  { %v1705_v55 = vcombine.high %v1704_v7, %v1704_v7  ;;  %v1712_v17 = vrot.slane %v1704_v7, %v3547_v8  ;;  %v4134_v7 = vld [vmem:[#allocation46_spill] sm:$0xff] }
 0x7b3   :  { %v1719_v2 = vrot.slane %v1705_v55, %v3547_v8  ;;  %v1723_v33 = vrot.slane %v1712_v17, %v3549_v23  ;;  %v4135_v17 = vld [vmem:[#allocation49_spill] sm:$0xff] }
 0x7b5   :  { %v1727_v61 = vrot.slane %v1719_v2, %v3549_v23  ;;  %v1730_v41 = vmul.f32 %v1723_v33, %v4120_v57  ;;  %v1731_v58 = vmul.f32 %v1723_v33, %v4121_v31  ;;  %v1732_v24 = vmul.f32 %v1723_v33, %v4122_v36 }
 0x7b6   :  { %v1733_v13 = vmul.f32 %v1723_v33, %v4123_v48  ;;  %v1734_v59 = vmul.f32 %v1723_v33, %v4124_v5  ;;  %v1735_v49 = vmul.f32 %v1723_v33, %v4125_v52  ;;  %v1736_v40 = vmul.f32 %v1723_v33, %v4126_v21 }
 0x7b7   :  { %v1737_v32 = vmul.f32 %v1723_v33, %v4127_v25  ;;  %v1738_v51 = vmul.f32 %v1727_v61, %v4128_v53  ;;  %v1739_v28 = vmul.f32 %v1727_v61, %v4129_v39  ;;  %v1740_v42 = vmul.f32 %v1727_v61, %v4130_v54 }
 0x7b8   :  { %v1741_v0 = vmul.f32 %v1727_v61, %v4131_v35  ;;  %v1742_v44 = vmul.f32 %v1727_v61, %v4132_v34  ;;  %v1743_v37 = vmul.f32 %v1727_v61, %v4133_v10  ;;  %v1744_v55 = vmul.f32 %v1727_v61, %v4134_v7 }
 0x7b9   :  { %v1745_v2 = vmul.f32 %v1727_v61, %v4135_v17  ;;  %v1746_v57 = vadd.f32 %v1730_v41, %v1473_v19  ;;  %v1747_v31 = vadd.f32 %v1731_v58, %v1474_v16  ;;  %v1748_v36 = vadd.f32 %v1732_v24, %v1475_v38 }
 0x7ba   :  { %v1749_v33 = vadd.f32 %v1733_v13, %v1476_v62  ;;  %v1750_v48 = vadd.f32 %v1734_v59, %v1477_v11  ;;  %v1751_v5 = vadd.f32 %v1735_v49, %v1478_v43  ;;  %v1752_v52 = vadd.f32 %v1736_v40, %v1479_v45 }
 0x7bb   :  { %v1753_v21 = vadd.f32 %v1737_v32, %v1480_v20  ;;  %v1754_v25 = vadd.f32 %v1738_v51, %v1481_v18  ;;  %v1755_v53 = vadd.f32 %v1739_v28, %v1482_v60  ;;  %v1756_v39 = vadd.f32 %v1740_v42, %v1483_v47 }
 0x7bc   :  { %v1757_v54 = vadd.f32 %v1741_v0, %v1484_v56  ;;  %v1758_v35 = vadd.f32 %v1742_v44, %v1485_v26  ;;  %v1759_v34 = vadd.f32 %v1743_v37, %v1486_v63  ;;  %v1760_v27 = vadd.f32 %v1744_v55, %v1487_v6 }
 0x7bd   :  { %v1761_v10 = vadd.f32 %v1745_v2, %v1488_v3  ;;  %v1762_v1 = vmax.f32 %v1746_v57, 0.0  ;;  %v1763_v7 = vmax.f32 %v1747_v31, 0.0  ;;  %v1764_v46 = vmax.f32 %v1748_v36, 0.0 }
 0x7be   :  { %v1765_v61 = vmax.f32 %v1749_v33, 0.0  ;;  %v1766_v19 = vmax.f32 %v1750_v48, 0.0  ;;  %v1767_v16 = vmax.f32 %v1751_v5, 0.0  ;;  %v1768_v38 = vmax.f32 %v1752_v52, 0.0 }
 0x7bf   :  { %v1769_v62 = vmax.f32 %v1753_v21, 0.0  ;;  %v1770_v11 = vmax.f32 %v1754_v25, 0.0  ;;  %v1771_v43 = vmax.f32 %v1755_v53, 0.0  ;;  %v1772_v45 = vmax.f32 %v1756_v39, 0.0  ;;  %2041 = vst [vmem:[#allocation2] sm:$0xff] %v1762_v1  ;;  %2042 = vst [vmem:[#allocation2 + $0x8] sm:$0xff] %v1763_v7 }
 0x7c0   :  { %2043 = vst [vmem:[#allocation2 + $0x10] sm:$0xff] %v1764_v46  ;;  %v1773_v20 = vmax.f32 %v1757_v54, 0.0  ;;  %v1774_v18 = vmax.f32 %v1758_v35, 0.0  ;;  %v1775_v60 = vmax.f32 %v1759_v34, 0.0  ;;  %v1776_v47 = vmax.f32 %v1760_v27, 0.0  ;;  %2044 = vst [vmem:[#allocation2 + $0x18] sm:$0xff] %v1765_v61 }
 0x7c1   :  { %2045 = vst [vmem:[#allocation2 + $0x20] sm:$0xff] %v1766_v19  ;;  %2046 = vst [vmem:[#allocation2 + $0x28] sm:$0xff] %v1767_v16  ;;  %v1777_v56 = vmax.f32 %v1761_v10, 0.0  ;;  %v1778_v26 = vadd.f32 %v1763_v7, %v1762_v1  ;;  %v1791_v63 = vadd.f32 %v1771_v43, %v1770_v11 }
 0x7c2   :  { %2047 = vst [vmem:[#allocation2 + $0x30] sm:$0xff] %v1768_v38  ;;  %2048 = vst [vmem:[#allocation2 + $0x38] sm:$0xff] %v1769_v62 }
 0x7c3   :  { %2049 = vst [vmem:[#allocation2 + $0x40] sm:$0xff] %v1770_v11  ;;  %2050 = vst [vmem:[#allocation2 + $0x48] sm:$0xff] %v1771_v43  ;;  %v1779_v6 = vadd.f32 %v1778_v26, %v1764_v46  ;;  %v1792_v3 = vadd.f32 %v1791_v63, %v1772_v45 }
 0x7c4   :  { %2051 = vst [vmem:[#allocation2 + $0x50] sm:$0xff] %v1772_v45  ;;  %2052 = vst [vmem:[#allocation2 + $0x58] sm:$0xff] %v1773_v20 }
 0x7c5   :  { %2053 = vst [vmem:[#allocation2 + $0x60] sm:$0xff] %v1774_v18  ;;  %2054 = vst [vmem:[#allocation2 + $0x68] sm:$0xff] %v1775_v60  ;;  %v1780_v41 = vadd.f32 %v1779_v6, %v1765_v61  ;;  %v1793_v27 = vadd.f32 %v1792_v3, %v1773_v20 }
 0x7c6   :  { %2055 = vst [vmem:[#allocation2 + $0x70] sm:$0xff] %v1776_v47  ;;  %2056 = vst [vmem:[#allocation2 + $0x78] sm:$0xff] %v1777_v56 }
 0x7c7   :  { %v1781_v58 = vadd.f32 %v1780_v41, %v1766_v19  ;;  %v1794_v24 = vadd.f32 %v1793_v27, %v1774_v18 }
 0x7c9   :  { %v1782_v13 = vadd.f32 %v1781_v58, %v1767_v16  ;;  %v1795_v59 = vadd.f32 %v1794_v24, %v1775_v60 }
 0x7cb   :  { %v1783_v49 = vadd.f32 %v1782_v13, %v1768_v38  ;;  %v1796_v1 = vadd.f32 %v1795_v59, %v1776_v47 }
 0x7cd   :  { %v1784_v40 = vadd.f32 %v1783_v49, %v1769_v62  ;;  %v1797_v32 = vadd.f32 %v1796_v1, %v1777_v56 }
 0x7cf   :  { %v1785_v51 = vrot.slane %v1784_v40, 4  ;;  %v1798_v28 = vrot.slane %v1797_v32, 4 }
 0x7d1   :  { %v1786_v42 = vadd.f32 %v1785_v51, %v1784_v40  ;;  %v1799_v0 = vadd.f32 %v1798_v28, %v1797_v32 }
 0x7d3   :  { %v1787_v44 = vrot.slane %v1786_v42, 2  ;;  %v1800_v37 = vrot.slane %v1799_v0, 2 }
 0x7d5   :  { %v1788_v55 = vadd.f32 %v1787_v44, %v1786_v42  ;;  %v1801_v46 = vadd.f32 %v1800_v37, %v1799_v0 }
 0x7d7   :  { %v1789_v17 = vrot.slane %v1788_v55, 1  ;;  %v1802_v2 = vrot.slane %v1801_v46, 1 }
 0x7d9   :  { %v1790_v57 = vadd.f32 %v1789_v17, %v1788_v55  ;;  %v1803_v31 = vadd.f32 %v1802_v2, %v1801_v46 }
 0x7db   :  { %v1804_v36 = vmul.f32 0.015625, %v1790_v57  ;;  %v1805_v33 = vmul.f32 0.015625, %v1803_v31 }
 0x7dd   :  { %v1808_v48 = vsel %vm601_vm2, %v1805_v33, %v1804_v36 }
 0x7de   :  { %2642 = vmatmul.mubr.f32.vlgmr.msra.gmra.mrb[26].mxu0 %v1808_v48 }
 0x8b1   :  { %v1876_v5 = vpop.f32.mrb[26].mxu0 }
 0x8b2   :  { %v1877_v52 = vadd.f32 %v3504_v12, %v1876_v5  ;;  %v2643_v21 = vpop.f32.mrb[27].mxu0 }
 0x8b4   :  { %v1880_v25 = vmax.f32 %v1877_v52, 0.0 }
 0x8b6   :  { %2653 = vmatmul.mubr.msk.f32.vlgmr.msra.gmra.mrb[26].mxu1 %vm681_vm3, %v1880_v25 }
 0x8b7   :  { %2886 = shalt.err (!%p2883_p4)
}
 0x8b8   :  { %s2887_s3 = scalar_lea.hbm %s3977_s14, 2048 }
 0x8b9   :  { %p2888_p5 = scmp.ne.s32.totalorder %s3977_s14, %s2887_s3  ;;  %p2891_p6 = scmp.lt.u32.totalorder %s2887_s3, %s3977_s14 }
 0x8bb   :  { %p2893_p7 = pnand %p2891_p6, %p2888_p5 }
 0x8bd   :  { %2896 = shalt.err (!%p2893_p7)
}
 0x8be   :  { %s2928_s4 = smov 128   ;;  %s2929_s16 = smov 8   ;;  %v4136_v11 = vld [vmem:[#allocation21_spill] sm:$0xff]  ;;  %v4137_v43 = vld [vmem:[#allocation20_spill] sm:$0xff]  ;;  %v4139_v60 = vld [vmem:[#allocation23_spill] sm:$0xff] }
 0x8bf   :  { %2084 = dma.vmem_to_hbm [thread:$0]  %s2079_s6, 2048, %s3977_s14, [#allocation3], %s2928_s4, %s2928_s4, %s2929_s16   ;;  %v4138_v20 = vld [vmem:[#allocation24_spill] sm:$0xff]  ;;  %v4140_v56 = vld [vmem:[#allocation29_spill] sm:$0xff]  ;;  %v4143_v27 = vld [vmem:[#allocation31_spill] sm:$0xff] }
 0x8c0   :  { %v4141_v63 = vld [vmem:[#allocation28_spill] sm:$0xff]  ;;  %v4144_v58 = vld [vmem:[#allocation37_spill] sm:$0xff]  ;;  %v4147_v1 = vld [vmem:[#allocation39_spill] sm:$0xff]  ;;  %s2930_s14 = smov [#allocation4]  }
 0x8c1   :  { %v4142_v3 = vld [vmem:[#allocation32_spill] sm:$0xff]  ;;  %v4148_v32 = vld [vmem:[#allocation45_spill] sm:$0xff]  ;;  %v4151_v37 = vld [vmem:[#allocation47_spill] sm:$0xff]  ;;  %s2090_s19 = sshll.u32 %s2930_s14, 4  ;;  %s2091_s19 = int_to_ptr.vmem [resolvable:$true] %s2090_s19 }
 0x8c2   :  { %v4145_v13 = vld [vmem:[#allocation36_spill] sm:$0xff]  ;;  %v4154_v25 = vld [vmem:[#allocation9_spill] sm:$0xff]  ;;  %s2897_s20 = scalar_lea.vmem %s2091_s19, 2048  ;;  %p2902_p9 = scmp.lt.s32.totalorder %s2091_s19, %s2091_s19 }
 0x8c3   :  { %v4146_v59 = vld [vmem:[#allocation40_spill] sm:$0xff]  ;;  %p2898_p8 = scmp.ne.s32.totalorder %s2091_s19, %s2897_s20  ;;  %p2903_p10 = scmp.lt.s32.totalorder %s2897_s20, %s2897_s20 }
 0x8c4   :  { %v4149_v28 = vld [vmem:[#allocation44_spill] sm:$0xff] }
 0x8c5   :  { %v4150_v0 = vld [vmem:[#allocation48_spill] sm:$0xff]  ;;  %p2904_p11 = por %p2903_p10, %p2902_p9 }
 0x8c6   :  { %v4152_v48 = vld [vmem:[#allocation16_spill] sm:$0xff] }
 0x8c7   :  { %v4153_v52 = vld [vmem:[#allocation8_spill] sm:$0xff]  ;;  %p2905_p12 = pnand %p2904_p11, %p2898_p8 }
 0x989   :  { %v1950_v12 = vpop.f32.mrb[26].mxu1 }
 0x98a   :  { %v1951_v53 = vadd.f32 %v3542_v22, %v1950_v12  ;;  %v2654_v39 = vpop.f32.mrb[27].mxu1 }
 0x98b   :  { %v4156_v39 = vld [vmem:[#allocation11_spill] sm:$0xff] }
 0x98c   :  { %v2154_v54 = vmul.f32 -1.442695, %v1951_v53  ;;  %v4155_v53 = vld [vmem:[#allocation10_spill] sm:$0xff] }
 0x98e   :  { %2871 = vpow2.f32 %v2154_v54  ;;  %v4157_v54 = vld [vmem:[#allocation12_spill] sm:$0xff] }
 0x998   :  { %v2872_v35 = vpop.eup %2871 }
 0x999   :  { %v1957_v34 = vadd.f32 1.0, %v2872_v35  ;;  %v4158_v35 = vld [vmem:[#allocation13_spill] sm:$0xff] }
 0x99b   :  { %2873 = vrcp.f32 %v1957_v34  ;;  %v4159_v34 = vld [vmem:[#allocation14_spill] sm:$0xff] }
 0x9a5   :  { %v2874_v10 = vpop.eup %2873 }
 0x9a6   :  { %v1967_v7 = vrot.slane %v2874_v10, %v3547_v8  ;;  %v4160_v10 = vld [vmem:[#allocation15_spill] sm:$0xff] }
 0x9a8   :  { %v1968_v61 = vcombine.high %v1967_v7, %v1967_v7  ;;  %v1975_v19 = vrot.slane %v1967_v7, %v3547_v8 }
 0x9aa   :  { %v1982_v16 = vrot.slane %v1968_v61, %v3547_v8  ;;  %v1986_v38 = vrot.slane %v1975_v19, %v3549_v23 }
 0x9ac   :  { %v1990_v62 = vrot.slane %v1982_v16, %v3549_v23  ;;  %v1993_v22 = vmul.f32 %v1986_v38, %v4136_v11  ;;  %v1994_v45 = vmul.f32 %v1986_v38, %v4137_v43  ;;  %v1995_v18 = vmul.f32 %v1986_v38, %v4138_v20 }
 0x9ad   :  { %v1996_v47 = vmul.f32 %v1986_v38, %v4139_v60  ;;  %v1997_v26 = vmul.f32 %v1986_v38, %v4140_v56  ;;  %v1998_v6 = vmul.f32 %v1986_v38, %v4141_v63  ;;  %v1999_v41 = vmul.f32 %v1986_v38, %v4142_v3 }
 0x9ae   :  { %v2000_v8 = vmul.f32 %v1986_v38, %v4143_v27  ;;  %v2001_v24 = vmul.f32 %v1990_v62, %v4144_v58  ;;  %v2002_v23 = vmul.f32 %v1990_v62, %v4145_v13  ;;  %v2003_v49 = vmul.f32 %v1990_v62, %v4146_v59 }
 0x9af   :  { %v2004_v40 = vmul.f32 %v1990_v62, %v4147_v1  ;;  %v2005_v51 = vmul.f32 %v1990_v62, %v4148_v32  ;;  %v2006_v42 = vmul.f32 %v1990_v62, %v4149_v28  ;;  %v2007_v44 = vmul.f32 %v1990_v62, %v4150_v0 }
 0x9b0   :  { %v2008_v55 = vmul.f32 %v1990_v62, %v4151_v37  ;;  %v2009_v46 = vadd.f32 %v1993_v22, %v3759_v9  ;;  %v2010_v17 = vadd.f32 %v1994_v45, %v3762_v15  ;;  %v2011_v2 = vadd.f32 %v1995_v18, %v3771_v50 }
 0x9b1   :  { %v2012_v57 = vadd.f32 %v1996_v47, %v3781_v30  ;;  %v2013_v31 = vadd.f32 %v1997_v26, %v3789_v4  ;;  %v2014_v36 = vadd.f32 %v1998_v6, %v3797_v14  ;;  %v2015_v33 = vadd.f32 %v1999_v41, %v3805_v29 }
 0x9b2   :  { %v2016_v5 = vadd.f32 %v2000_v8, %v4152_v48  ;;  %v2017_v21 = vadd.f32 %v2001_v24, %v4153_v52  ;;  %v2018_v12 = vadd.f32 %v2002_v23, %v4154_v25  ;;  %v2019_v9 = vadd.f32 %v2003_v49, %v4155_v53 }
 0x9b3   :  { %v2020_v15 = vadd.f32 %v2004_v40, %v4156_v39  ;;  %v2021_v50 = vadd.f32 %v2005_v51, %v4157_v54  ;;  %v2022_v30 = vadd.f32 %v2006_v42, %v4158_v35  ;;  %v2023_v4 = vadd.f32 %v2007_v44, %v4159_v34 }
 0x9b4   :  { %v2024_v14 = vadd.f32 %v2008_v55, %v4160_v10  ;;  %v2025_v7 = vmax.f32 %v2009_v46, 0.0  ;;  %v2026_v29 = vmax.f32 %v2010_v17, 0.0  ;;  %v2027_v61 = vmax.f32 %v2011_v2, 0.0 }
 0x9b5   :  { %v2028_v19 = vmax.f32 %v2012_v57, 0.0  ;;  %v2029_v16 = vmax.f32 %v2013_v31, 0.0  ;;  %v2030_v38 = vmax.f32 %v2014_v36, 0.0  ;;  %v2031_v62 = vmax.f32 %v2015_v33, 0.0 }
 0x9b6   :  { %v2032_v11 = vmax.f32 %v2016_v5, 0.0  ;;  %v2033_v22 = vmax.f32 %v2017_v21, 0.0  ;;  %v2034_v43 = vmax.f32 %v2018_v12, 0.0  ;;  %v2035_v45 = vmax.f32 %v2019_v9, 0.0  ;;  %2057 = vst [vmem:[#allocation4] sm:$0xff] %v2025_v7  ;;  %2058 = vst [vmem:[#allocation4 + $0x8] sm:$0xff] %v2026_v29 }
 0x9b7   :  { %2059 = vst [vmem:[#allocation4 + $0x10] sm:$0xff] %v2027_v61  ;;  %v2036_v20 = vmax.f32 %v2020_v15, 0.0  ;;  %v2037_v18 = vmax.f32 %v2021_v50, 0.0  ;;  %v2038_v60 = vmax.f32 %v2022_v30, 0.0  ;;  %v2039_v47 = vmax.f32 %v2023_v4, 0.0  ;;  %2060 = vst [vmem:[#allocation4 + $0x18] sm:$0xff] %v2028_v19 }
 0x9b8   :  { %2061 = vst [vmem:[#allocation4 + $0x20] sm:$0xff] %v2029_v16  ;;  %2062 = vst [vmem:[#allocation4 + $0x28] sm:$0xff] %v2030_v38  ;;  %v2040_v56 = vmax.f32 %v2024_v14, 0.0 }
 0x9b9   :  { %2063 = vst [vmem:[#allocation4 + $0x30] sm:$0xff] %v2031_v62  ;;  %2064 = vst [vmem:[#allocation4 + $0x38] sm:$0xff] %v2032_v11 }
 0x9ba   :  { %2065 = vst [vmem:[#allocation4 + $0x40] sm:$0xff] %v2033_v22  ;;  %2066 = vst [vmem:[#allocation4 + $0x48] sm:$0xff] %v2034_v43 }
 0x9bb   :  { %2067 = vst [vmem:[#allocation4 + $0x50] sm:$0xff] %v2035_v45  ;;  %2068 = vst [vmem:[#allocation4 + $0x58] sm:$0xff] %v2036_v20 }
 0x9bc   :  { %2069 = vst [vmem:[#allocation4 + $0x60] sm:$0xff] %v2037_v18  ;;  %2070 = vst [vmem:[#allocation4 + $0x68] sm:$0xff] %v2038_v60 }
 0x9bd   :  { %2071 = vst [vmem:[#allocation4 + $0x70] sm:$0xff] %v2039_v47  ;;  %2072 = vst [vmem:[#allocation4 + $0x78] sm:$0xff] %v2040_v56 }
 0x9be   :  { %2908 = shalt.err (!%p2905_p12)
}
 0x9bf   :  { %s2909_s23 = scalar_lea.hbm %s3978_s15, 2048 }
 0x9c0   :  { %p2910_p13 = scmp.ne.s32.totalorder %s3978_s15, %s2909_s23  ;;  %p2913_p0 = scmp.lt.u32.totalorder %s2909_s23, %s3978_s15 }
 0x9c2   :  { %p2915_p1 = pnand %p2913_p0, %p2910_p13 }
 0x9c4   :  { %2918 = shalt.err (!%p2915_p1)
}
 0x9c5   :  { %2096 = dma.vmem_to_hbm [thread:$0]  %s2091_s19, 2048, %s3978_s15, [#allocation5], %s2928_s4, %s2928_s4, %s2929_s16  }
 0x9c6   :  { %2919 = dma.done.wait [#allocation3], 2048  }
 0x9c7   :  { %2920 = vsyncadd [#allocation3], 4294965248 }
 0x9c8   :  { %2921 = dma.done.wait [#allocation5], 2048  }
 0x9c9   :  { %2922 = vsyncadd [#allocation5], 4294965248 }
 0x9ca   :  { %2103 = vsyncpa [#allocation3], 1 }
 0x9cb   :  { %2104 = vsyncpa [#allocation5], 1 }

</bundles_post_ra>
